<compile_context>
chip_gen: v6e
topology: v6e:2x2x1
jax: 0.10.0
libtpu: 0.0.40
codegen_flags: <defaults>
</compile_context>

<pallas_src>
import jax
import jax.numpy as jnp
from jax.experimental import pallas as pl
from jax.experimental.pallas import tpu as pltpu

EPS = 1e-5


def fused_kernel(a_ref, b_ref, w_ref, gamma_ref, beta_ref, o_ref):
    # x152 = a + b ; x153 = relu(x152)           -> (C_in, P)
    x = jnp.maximum(a_ref[...] + b_ref[...], 0.0)
    # x154 = 1x1 conv (no bias): (C_blk, C_in) @ (C_in, P) -> (C_blk, P)
    y = jnp.dot(w_ref[...], x, preferred_element_type=jnp.float32)
    # x155 = BatchNorm2d (training mode): batch stats over (N, H, W) == axis 1.
    # Single-pass variance, then fold BN into one scale/shift.
    m = jnp.mean(y, axis=1, keepdims=True)            # (C_blk, 1)
    m2 = jnp.mean(y * y, axis=1, keepdims=True)       # (C_blk, 1)
    var = m2 - m * m
    inv = jax.lax.rsqrt(var + EPS)
    s = inv * gamma_ref[...]                          # (C_blk, 1)
    t = beta_ref[...] - m * s                         # (C_blk, 1)
    o_ref[...] = y * s + t


def forward(x137, x151, conv_weight, bn_gamma, bn_beta):
    """x137, x151: (1, C, H, W) float32. conv_weight: (C_out, C_in, 1, 1)."""
    N, C, H, W = x137.shape
    assert N == 1, "kernel assumes N == 1 (free NCHW -> (C, P) reshape)"
    P = H * W

    # All reshapes below are free (no data movement), no transposes.
    a = x137.reshape(C, P)
    b = x151.reshape(C, P)
    w = conv_weight.reshape(C, C)          # (C_out, C_in)
    gamma = bn_gamma.reshape(C, 1)
    beta = bn_beta.reshape(C, 1)

    # Split output channels into 2 independent blocks (BN stats are
    # per-channel, so blocks do not interact). Parallel across TCs on v7x.
    c_blk = C // 2                          # 160, multiple of 8

    cost = pl.CostEstimate(
        flops=2 * C * C * P + 4 * C * P,
        transcendentals=C,
        bytes_accessed=(2 * C * P + C * C + 2 * C + C * P) * 4,
    )

    out2d = pl.pallas_call(
        fused_kernel,
        out_shape=jax.ShapeDtypeStruct((C, P), jnp.float32),
        grid=(C // c_blk,),
        in_specs=[
            pl.BlockSpec((C, P), lambda i: (0, 0)),       # a (full)
            pl.BlockSpec((C, P), lambda i: (0, 0)),       # b (full)
            pl.BlockSpec((c_blk, C), lambda i: (i, 0)),   # weight rows
            pl.BlockSpec((c_blk, 1), lambda i: (i, 0)),   # gamma
            pl.BlockSpec((c_blk, 1), lambda i: (i, 0)),   # beta
        ],
        out_specs=pl.BlockSpec((c_blk, P), lambda i: (i, 0)),
        compiler_params=pltpu.CompilerParams(
            dimension_semantics=("parallel",),
        ),
        cost_estimate=cost,
    )(a, b, w, gamma, beta)

    return out2d.reshape(N, C, H, W)


if __name__ == "__main__":
    key = jax.random.PRNGKey(0)
    k1, k2, k3 = jax.random.split(key, 3)

    N, C, H, W = 1, 320, 14, 14
    x137 = jax.random.normal(k1, (N, C, H, W), dtype=jnp.float32)
    x151 = jax.random.normal(k2, (N, C, H, W), dtype=jnp.float32)

    # Deterministic parameter init (shapes from the module __init__).
    conv_weight = jax.random.normal(k3, (C, C, 1, 1), dtype=jnp.float32) * 0.05
    bn_gamma = jnp.ones((C,), dtype=jnp.float32)
    bn_beta = jnp.zeros((C,), dtype=jnp.float32)

    # TODO(synk): running_mean/running_var updates of BatchNorm2d (training
    # side-state) are not reproduced; only the normalized forward output is.
    out = forward(x137, x151, conv_weight, bn_gamma, bn_beta)
    jax.block_until_ready(out)
    assert out.shape == (N, C, H, W), out.shape
    print("KERNEL_OK")
</pallas_src>

<mosaic_0001>
module attributes {stable_mosaic.version = 11 : i64} {
  func.func @fused_kernel(%arg0: i32, %arg1: memref<320x196xf32, #tpu.memory_space<vmem>>, %arg2: memref<320x196xf32, #tpu.memory_space<vmem>>, %arg3: memref<160x320xf32, #tpu.memory_space<vmem>>, %arg4: memref<160x1xf32, #tpu.memory_space<vmem>>, %arg5: memref<160x1xf32, #tpu.memory_space<vmem>>, %arg6: memref<160x196xf32, #tpu.memory_space<vmem>>) attributes {dimension_semantics = [#tpu.dimension_semantics<parallel>], iteration_bounds = array<i64: 2>, scalar_prefetch = 0 : i64, scratch_operands = 0 : i64, tpu.core_type = #tpu.core_type<tc>, window_params = [{pipeline_mode = #tpu.pipeline_mode<synchronous>, transform_indices = @transform_0, window_bounds = array<i64: 320, 196>}, {pipeline_mode = #tpu.pipeline_mode<synchronous>, transform_indices = @transform_1, window_bounds = array<i64: 320, 196>}, {transform_indices = @transform_2, window_bounds = array<i64: 160, 320>}, {transform_indices = @transform_3, window_bounds = array<i64: 160, 1>}, {transform_indices = @transform_4, window_bounds = array<i64: 160, 1>}, {transform_indices = @transform_5, window_bounds = array<i64: 160, 196>}]} {
    %c0 = arith.constant 0 : index
    %c0_0 = arith.constant 0 : index
    %0 = vector.load %arg1[%c0, %c0_0] : memref<320x196xf32, #tpu.memory_space<vmem>>, vector<320x196xf32>
    %c0_1 = arith.constant 0 : index
    %c0_2 = arith.constant 0 : index
    %1 = vector.load %arg2[%c0_1, %c0_2] : memref<320x196xf32, #tpu.memory_space<vmem>>, vector<320x196xf32>
    %2 = arith.addf %0, %1 : vector<320x196xf32>
    %cst = arith.constant 0.000000e+00 : f32
    %3 = vector.broadcast %cst : f32 to vector<320x196xf32>
    %4 = arith.maximumf %2, %3 : vector<320x196xf32>
    %c0_3 = arith.constant 0 : index
    %c0_4 = arith.constant 0 : index
    %5 = vector.load %arg3[%c0_3, %c0_4] : memref<160x320xf32, #tpu.memory_space<vmem>>, vector<160x320xf32>
    %cst_5 = arith.constant dense<0.000000e+00> : vector<160x196xf32>
    %6 = tpu.matmul %5, %4, %cst_5 {dimension_numbers = #tpu.dot_dimension_numbers<[1], [0], [0], [1], [0, 0, 1, 1], [], []>} : vector<160x320xf32>, vector<320x196xf32>, vector<160x196xf32> -> vector<160x196xf32>
    %cst_6 = arith.constant dense<0.000000e+00> : vector<160xf32>
    %7 = vector.multi_reduction <add>, %6, %cst_6 [1] : vector<160x196xf32> to vector<160xf32>
    %8 = vector.shape_cast %7 : vector<160xf32> to vector<160x1xf32>
    %cst_7 = arith.constant 1.960000e+02 : f32
    %9 = vector.broadcast %cst_7 : f32 to vector<160x1xf32>
    %10 = arith.divf %8, %9 : vector<160x1xf32>
    %11 = arith.mulf %6, %6 : vector<160x196xf32>
    %cst_8 = arith.constant dense<0.000000e+00> : vector<160xf32>
    %12 = vector.multi_reduction <add>, %11, %cst_8 [1] : vector<160x196xf32> to vector<160xf32>
    %13 = vector.shape_cast %12 : vector<160xf32> to vector<160x1xf32>
    %cst_9 = arith.constant 1.960000e+02 : f32
    %14 = vector.broadcast %cst_9 : f32 to vector<160x1xf32>
    %15 = arith.divf %13, %14 : vector<160x1xf32>
    %16 = arith.mulf %10, %10 : vector<160x1xf32>
    %17 = arith.subf %15, %16 : vector<160x1xf32>
    %cst_10 = arith.constant 9.99999974E-6 : f32
    %18 = vector.broadcast %cst_10 : f32 to vector<160x1xf32>
    %19 = arith.addf %17, %18 : vector<160x1xf32>
    %20 = math.rsqrt %19 : vector<160x1xf32>
    %c0_11 = arith.constant 0 : index
    %c0_12 = arith.constant 0 : index
    %21 = vector.load %arg4[%c0_11, %c0_12] : memref<160x1xf32, #tpu.memory_space<vmem>>, vector<160x1xf32>
    %22 = arith.mulf %20, %21 : vector<160x1xf32>
    %c0_13 = arith.constant 0 : index
    %c0_14 = arith.constant 0 : index
    %23 = vector.load %arg5[%c0_13, %c0_14] : memref<160x1xf32, #tpu.memory_space<vmem>>, vector<160x1xf32>
    %24 = arith.mulf %10, %22 : vector<160x1xf32>
    %25 = arith.subf %23, %24 : vector<160x1xf32>
    %26 = vector.broadcast %22 : vector<160x1xf32> to vector<160x196xf32>
    %27 = arith.mulf %6, %26 : vector<160x196xf32>
    %28 = vector.broadcast %25 : vector<160x1xf32> to vector<160x196xf32>
    %29 = arith.addf %27, %28 : vector<160x196xf32>
    %c0_15 = arith.constant 0 : index
    %c0_16 = arith.constant 0 : index
    %30 = vector.load %arg6[%c0_15, %c0_16] : memref<160x196xf32, #tpu.memory_space<vmem>>, vector<160x196xf32>
    tpu.vector_store %arg6[%c0_15, %c0_16], %29 {strides = array<i32>} : memref<160x196xf32, #tpu.memory_space<vmem>>, vector<160x196xf32>,
    return
  }
  func.func @transform_0(%arg0: i32) -> (i32, i32) {
    %c0_i32 = arith.constant 0 : i32
    %c0_i32_0 = arith.constant 0 : i32
    %c0_i32_1 = arith.constant 0 : i32
    return %c0_i32, %c0_i32_0 : i32, i32
  }
  func.func @transform_1(%arg0: i32) -> (i32, i32) {
    %c0_i32 = arith.constant 0 : i32
    %c0_i32_0 = arith.constant 0 : i32
    %c0_i32_1 = arith.constant 0 : i32
    return %c0_i32, %c0_i32_0 : i32, i32
  }
  func.func @transform_2(%arg0: i32) -> (i32, i32) {
    %c0_i32 = arith.constant 0 : i32
    %c0_i32_0 = arith.constant 0 : i32
    return %arg0, %c0_i32 : i32, i32
  }
  func.func @transform_3(%arg0: i32) -> (i32, i32) {
    %c0_i32 = arith.constant 0 : i32
    %c0_i32_0 = arith.constant 0 : i32
    return %arg0, %c0_i32 : i32, i32
  }
  func.func @transform_4(%arg0: i32) -> (i32, i32) {
    %c0_i32 = arith.constant 0 : i32
    %c0_i32_0 = arith.constant 0 : i32
    return %arg0, %c0_i32 : i32, i32
  }
  func.func @transform_5(%arg0: i32) -> (i32, i32) {
    %c0_i32 = arith.constant 0 : i32
    %c0_i32_0 = arith.constant 0 : i32
    return %arg0, %c0_i32 : i32, i32
  }
}

</mosaic_0001>

<bundles_post_ra>
// kernel: tpu_custom_call.1
= control target key start
LH: loop header
LB: loop body
LE: loop exit
PB: predicated region body
PF: predicated region fallthrough
CT: control target
= control target key end

     0   :  { %s2038_s18 = smov 0   ;;  %s3186_s0 = inlined_call_operand.vmem [shape: f32[320,196], index: 0, kind: input, shape index: {}]   ;;  %s3187_s1 = inlined_call_operand.vmem [shape: f32[320,196], index: 1, kind: input, shape index: {}]   ;;  %s3188_s2 = inlined_call_operand.vmem [shape: f32[320,320], index: 2, kind: input, shape index: {}]   ;;  %s3189_s3 = inlined_call_operand.vmem [shape: f32[320,1], index: 3, kind: input, shape index: {}]   ;;  %s3190_s4 = inlined_call_operand.vmem [shape: f32[320,1], index: 4, kind: input, shape index: {}]   ;;  %s3191_s5 = inlined_call_operand.vmem [shape: f32[320,196], index: 5, kind: output, shape index: {}]  }
   0x1 LB: > { %s1912_s19 = sadd.s32 4294967295, %s2004_s18   ;;  %p1916_p0 = scmp.ge.s32.totalorder %s2004_s18, 1  ;;  %s2004_s18 = sphi %s2038_s18, %s15_s18  }
   0x2   : > { %p211_p1 = scmp.lt.s32.totalorder %s2004_s18, 3 }
   0x4   : > { %p212_p2 = pnand %p1916_p0, %p211_p1 }
   0x6   : > { %215 = sbr.rel (%p212_p2) target bundleno = 666 (0x29a), region = 40 }
   0xb   : > { %v308_v0 = vld [vmem:[%s3186_s0 + $0xf8] sm:$0xff]  ;;  %v307_v2 = vld [vmem:[%s3186_s0 + $0xf0] sm:$0xff]  ;;  %v306_v5 = vld [vmem:[%s3186_s0 + $0xe8] sm:$0xff]  ;;  %v2006_v7 = vmov 0.0   ;;  %s2345_s28 = smul.u32 20, %s1912_s19  ;;  %vm657_vm0 = vcmask 523264  }
   0xc   : > { %v388_v1 = vld [vmem:[%s3187_s1 + $0xf8] sm:$0xff]  ;;  %v387_v4 = vld [vmem:[%s3187_s1 + $0xf0] sm:$0xff]  ;;  %v386_v6 = vld [vmem:[%s3187_s1 + $0xe8] sm:$0xff]  ;;  %967 = vmatprep.mubr.f32.mxu1 %v2006_v7  ;;  %vm1088_vm1 = vcmask 556032  }
   0xd   : > { %v468_v3 = vadd.f32 %v388_v1, %v308_v0  ;;  %v467_v8 = vadd.f32 %v387_v4, %v307_v2  ;;  %v466_v9 = vadd.f32 %v386_v6, %v306_v5  ;;  %v305_v10 = vld [vmem:[%s3186_s0 + $0xe0] sm:$0xff]  ;;  %v304_v12 = vld [vmem:[%s3186_s0 + $0xd8] sm:$0xff]  ;;  %v303_v16 = vld [vmem:[%s3186_s0 + $0xd0] sm:$0xff]  ;;  %p252_p3 = scmp.lt.s32.totalorder %s2345_s28, 39 }
   0xe   : > { %v385_v11 = vld [vmem:[%s3187_s1 + $0xe0] sm:$0xff]  ;;  %v384_v15 = vld [vmem:[%s3187_s1 + $0xd8] sm:$0xff]  ;;  %v383_v17 = vld [vmem:[%s3187_s1 + $0xd0] sm:$0xff] }
   0xf   : > { %v548_v13 = vmax.f32 %v468_v3, 0.0  ;;  %v465_v14 = vadd.f32 %v385_v11, %v305_v10  ;;  %v547_v18 = vmax.f32 %v467_v8, 0.0  ;;  %v546_v19 = vmax.f32 %v466_v9, 0.0  ;;  %v302_v22 = vld [vmem:[%s3186_s0 + $0xc8] sm:$0xff]  ;;  %v301_v24 = vld [vmem:[%s3186_s0 + $0xc0] sm:$0xff]  ;;  %v300_v28 = vld [vmem:[%s3186_s0 + $0xb8] sm:$0xff] }
  0x10   : > { %v464_v20 = vadd.f32 %v384_v15, %v304_v12  ;;  %v463_v21 = vadd.f32 %v383_v17, %v303_v16  ;;  %v382_v23 = vld [vmem:[%s3187_s1 + $0xc8] sm:$0xff]  ;;  %v381_v27 = vld [vmem:[%s3187_s1 + $0xc0] sm:$0xff]  ;;  %v380_v29 = vld [vmem:[%s3187_s1 + $0xb8] sm:$0xff]  ;;  %s3223_s28 = smov (!%p252_p3, %s2345_s28), 39 }
  0x11   : > { %718 = vmatprep.subr.mxu0 %v548_v13  ;;  %v545_v25 = vmax.f32 %v465_v14, 0.0  ;;  %v462_v26 = vadd.f32 %v382_v23, %v302_v22  ;;  %v461_v32 = vadd.f32 %v381_v27, %v301_v24  ;;  %v460_v33 = vadd.f32 %v380_v29, %v300_v28  ;;  %v299_v34 = vld [vmem:[%s3186_s0 + $0xb0] sm:$0xff]  ;;  %v298_v36 = vld [vmem:[%s3186_s0 + $0xa8] sm:$0xff]  ;;  %v297_v40 = vld [vmem:[%s3186_s0 + $0xa0] sm:$0xff]  ;;  %s1945_s14 = smul.u32 24, %s3223_s28  ;;  %s1944_s30 = sshll.u32 %s3223_s28, 4 }
  0x12   : > { %719 = vmatpush1.msra.mxu0 %v547_v18  ;;  %v544_v30 = vmax.f32 %v464_v20, 0.0  ;;  %v543_v31 = vmax.f32 %v463_v21, 0.0  ;;  %v379_v35 = vld [vmem:[%s3187_s1 + $0xb0] sm:$0xff]  ;;  %v378_v39 = vld [vmem:[%s3187_s1 + $0xa8] sm:$0xff]  ;;  %v377_v41 = vld [vmem:[%s3187_s1 + $0xa0] sm:$0xff]  ;;  %s3085_s8 = scalar_lea.vmem %s3191_s5, %s1944_s30 }
  0x13   : > { %720 = vmatprep.subr.mxu0 %v546_v19  ;;  %v542_v37 = vmax.f32 %v462_v26, 0.0  ;;  %v459_v38 = vadd.f32 %v379_v35, %v299_v34  ;;  %v541_v42 = vmax.f32 %v461_v32, 0.0  ;;  %v458_v43 = vadd.f32 %v378_v39, %v298_v36  ;;  %v296_v45 = vld [vmem:[%s3186_s0 + $0x98] sm:$0xff]  ;;  %v295_v47 = vld [vmem:[%s3186_s0 + $0x90] sm:$0xff]  ;;  %v294_v51 = vld [vmem:[%s3186_s0 + $0x88] sm:$0xff]  ;;  %s2555_s21 = scalar_lea.vmem %s3188_s2, %s1945_s14 }
  0x14   : > { %721 = vmatpush1.msra.mxu0 %v545_v25  ;;  %v457_v44 = vadd.f32 %v377_v41, %v297_v40  ;;  %v376_v46 = vld [vmem:[%s3187_s1 + $0x98] sm:$0xff]  ;;  %v540_v48 = vmax.f32 %v460_v33, 0.0  ;;  %v375_v50 = vld [vmem:[%s3187_s1 + $0x90] sm:$0xff]  ;;  %v374_v52 = vld [vmem:[%s3187_s1 + $0x88] sm:$0xff] }
  0x15   : > { %722 = vmatprep.subr.mxu0 %v544_v30  ;;  %v456_v49 = vadd.f32 %v376_v46, %v296_v45  ;;  %v539_v53 = vmax.f32 %v459_v38, 0.0  ;;  %v455_v54 = vadd.f32 %v375_v50, %v295_v47  ;;  %v293_v55 = vld [vmem:[%s3186_s0 + $0x80] sm:$0xff]  ;;  %v292_v57 = vld [vmem:[%s3186_s0 + $0x78] sm:$0xff]  ;;  %v538_v58 = vmax.f32 %v458_v43, 0.0  ;;  %v291_v61 = vld [vmem:[%s3186_s0 + $0x70] sm:$0xff] }
  0x16   : > { %723 = vmatpush1.msra.mxu0 %v543_v31  ;;  %v373_v56 = vld [vmem:[%s3187_s1 + $0x80] sm:$0xff]  ;;  %v454_v59 = vadd.f32 %v374_v52, %v294_v51  ;;  %v372_v60 = vld [vmem:[%s3187_s1 + $0x78] sm:$0xff]  ;;  %v371_v62 = vld [vmem:[%s3187_s1 + $0x70] sm:$0xff]  ;;  %v537_v63 = vmax.f32 %v457_v44, 0.0 }
  0x17   : > { %724 = vmatprep.subr.mxu0 %v542_v37  ;;  %v453_v0 = vadd.f32 %v373_v56, %v293_v55  ;;  %v290_v1 = vld [vmem:[%s3186_s0 + $0x68] sm:$0xff]  ;;  %v536_v3 = vmax.f32 %v456_v49, 0.0  ;;  %v452_v4 = vadd.f32 %v372_v60, %v292_v57  ;;  %v289_v5 = vld [vmem:[%s3186_s0 + $0x60] sm:$0xff]  ;;  %v535_v8 = vmax.f32 %v455_v54, 0.0  ;;  %v288_v10 = vld [vmem:[%s3186_s0 + $0x58] sm:$0xff] }
  0x18   : > { %725 = vmatpush1.msra.mxu0 %v541_v42  ;;  %v370_v2 = vld [vmem:[%s3187_s1 + $0x68] sm:$0xff]  ;;  %v369_v6 = vld [vmem:[%s3187_s1 + $0x60] sm:$0xff]  ;;  %v451_v9 = vadd.f32 %v371_v62, %v291_v61  ;;  %v368_v11 = vld [vmem:[%s3187_s1 + $0x58] sm:$0xff]  ;;  %v534_v12 = vmax.f32 %v454_v59, 0.0 }
  0x19   : > { %726 = vmatprep.subr.mxu0 %v540_v48  ;;  %v450_v13 = vadd.f32 %v370_v2, %v290_v1  ;;  %v287_v14 = vld [vmem:[%s3186_s0 + $0x50] sm:$0xff]  ;;  %v533_v16 = vmax.f32 %v453_v0, 0.0  ;;  %v449_v17 = vadd.f32 %v369_v6, %v289_v5  ;;  %v286_v18 = vld [vmem:[%s3186_s0 + $0x48] sm:$0xff]  ;;  %v532_v20 = vmax.f32 %v452_v4, 0.0  ;;  %v285_v22 = vld [vmem:[%s3186_s0 + $0x40] sm:$0xff] }
  0x1a   : > { %727 = vmatpush1.msra.mxu0 %v539_v53  ;;  %v367_v15 = vld [vmem:[%s3187_s1 + $0x50] sm:$0xff]  ;;  %v366_v19 = vld [vmem:[%s3187_s1 + $0x48] sm:$0xff]  ;;  %v448_v21 = vadd.f32 %v368_v11, %v288_v10  ;;  %v365_v23 = vld [vmem:[%s3187_s1 + $0x40] sm:$0xff]  ;;  %v531_v24 = vmax.f32 %v451_v9, 0.0 }
  0x1b   : > { %728 = vmatprep.subr.mxu0 %v538_v58  ;;  %v447_v25 = vadd.f32 %v367_v15, %v287_v14  ;;  %v284_v26 = vld [vmem:[%s3186_s0 + $0x38] sm:$0xff]  ;;  %v530_v28 = vmax.f32 %v450_v13, 0.0  ;;  %v446_v29 = vadd.f32 %v366_v19, %v286_v18  ;;  %v283_v30 = vld [vmem:[%s3186_s0 + $0x30] sm:$0xff]  ;;  %v529_v32 = vmax.f32 %v449_v17, 0.0  ;;  %v282_v34 = vld [vmem:[%s3186_s0 + $0x28] sm:$0xff] }
  0x1c   : > { %729 = vmatpush1.msra.mxu0 %v537_v63  ;;  %v364_v27 = vld [vmem:[%s3187_s1 + $0x38] sm:$0xff]  ;;  %v363_v31 = vld [vmem:[%s3187_s1 + $0x30] sm:$0xff]  ;;  %v445_v33 = vadd.f32 %v365_v23, %v285_v22  ;;  %v362_v35 = vld [vmem:[%s3187_s1 + $0x28] sm:$0xff]  ;;  %v528_v36 = vmax.f32 %v448_v21, 0.0 }
  0x1d   : > { %730 = vmatprep.subr.mxu0 %v536_v3  ;;  %v444_v37 = vadd.f32 %v364_v27, %v284_v26  ;;  %v281_v38 = vld [vmem:[%s3186_s0 + $0x20] sm:$0xff]  ;;  %v527_v40 = vmax.f32 %v447_v25, 0.0  ;;  %v443_v41 = vadd.f32 %v363_v31, %v283_v30  ;;  %v280_v42 = vld [vmem:[%s3186_s0 + $0x18] sm:$0xff]  ;;  %v526_v44 = vmax.f32 %v446_v29, 0.0  ;;  %v279_v46 = vld [vmem:[%s3186_s0 + $0x10] sm:$0xff] }
  0x1e   : > { %731 = vmatpush1.msra.mxu0 %v535_v8  ;;  %v361_v39 = vld [vmem:[%s3187_s1 + $0x20] sm:$0xff]  ;;  %v360_v43 = vld [vmem:[%s3187_s1 + $0x18] sm:$0xff]  ;;  %v442_v45 = vadd.f32 %v362_v35, %v282_v34  ;;  %v359_v47 = vld [vmem:[%s3187_s1 + $0x10] sm:$0xff]  ;;  %v525_v48 = vmax.f32 %v445_v33, 0.0 }
  0x1f   : > { %732 = vmatprep.subr.mxu0 %v534_v12  ;;  %v441_v49 = vadd.f32 %v361_v39, %v281_v38  ;;  %v278_v50 = vld [vmem:[%s3186_s0 + $0x8] sm:$0xff]  ;;  %v524_v52 = vmax.f32 %v444_v37, 0.0  ;;  %v440_v53 = vadd.f32 %v360_v43, %v280_v42  ;;  %v277_v54 = vld [vmem:[%s3186_s0] sm:$0xff]  ;;  %v523_v56 = vmax.f32 %v443_v41, 0.0  ;;  %v340_v58 = vld [vmem:[%s3186_s0 + $0x1f8] sm:$0xff] }
  0x20   : > { %733 = vmatpush1.msra.mxu0 %v533_v16  ;;  %v358_v51 = vld [vmem:[%s3187_s1 + $0x8] sm:$0xff]  ;;  %v357_v55 = vld [vmem:[%s3187_s1] sm:$0xff]  ;;  %v439_v57 = vadd.f32 %v359_v47, %v279_v46  ;;  %v420_v59 = vld [vmem:[%s3187_s1 + $0x1f8] sm:$0xff]  ;;  %v522_v60 = vmax.f32 %v442_v45, 0.0 }
  0x21   : > { %734 = vmatprep.subr.mxu0 %v532_v20  ;;  %v438_v61 = vadd.f32 %v358_v51, %v278_v50  ;;  %v339_v62 = vld [vmem:[%s3186_s0 + $0x1f0] sm:$0xff]  ;;  %v338_v0 = vld [vmem:[%s3186_s0 + $0x1e8] sm:$0xff]  ;;  %v521_v1 = vmax.f32 %v441_v49, 0.0  ;;  %v437_v2 = vadd.f32 %v357_v55, %v277_v54  ;;  %v337_v4 = vld [vmem:[%s3186_s0 + $0x1e0] sm:$0xff]  ;;  %v520_v6 = vmax.f32 %v440_v53, 0.0 }
  0x22   : > { %735 = vmatpush1.msra.mxu0 %v531_v24  ;;  %v419_v63 = vld [vmem:[%s3187_s1 + $0x1f0] sm:$0xff]  ;;  %v418_v3 = vld [vmem:[%s3187_s1 + $0x1e8] sm:$0xff]  ;;  %v417_v5 = vld [vmem:[%s3187_s1 + $0x1e0] sm:$0xff]  ;;  %v500_v8 = vadd.f32 %v420_v59, %v340_v58  ;;  %v519_v12 = vmax.f32 %v439_v57, 0.0 }
  0x23   : > { %736 = vmatprep.subr.mxu0 %v530_v28  ;;  %v336_v9 = vld [vmem:[%s3186_s0 + $0x1d8] sm:$0xff]  ;;  %v335_v11 = vld [vmem:[%s3186_s0 + $0x1d0] sm:$0xff]  ;;  %v499_v13 = vadd.f32 %v419_v63, %v339_v62  ;;  %v334_v15 = vld [vmem:[%s3186_s0 + $0x1c8] sm:$0xff]  ;;  %v518_v17 = vmax.f32 %v438_v61, 0.0  ;;  %v498_v18 = vadd.f32 %v418_v3, %v338_v0  ;;  %v517_v23 = vmax.f32 %v437_v2, 0.0 }
  0x24   : > { %737 = vmatpush1.msra.mxu0 %v529_v32  ;;  %v416_v10 = vld [vmem:[%s3187_s1 + $0x1d8] sm:$0xff]  ;;  %v415_v14 = vld [vmem:[%s3187_s1 + $0x1d0] sm:$0xff]  ;;  %v414_v16 = vld [vmem:[%s3187_s1 + $0x1c8] sm:$0xff]  ;;  %v2293_v24 = vadd.f32 %v417_v5, %v337_v4  ;;  %v580_v29 = vmax.f32 %v500_v8, 0.0 }
  0x25   : > { %738 = vmatprep.subr.mxu0 %v528_v36  ;;  %v333_v19 = vld [vmem:[%s3186_s0 + $0x1c0] sm:$0xff]  ;;  %v356_v21 = vld [vmem:[%s3186_s0 + $0x278] sm:$0xff]  ;;  %v355_v28 = vld [vmem:[%s3186_s0 + $0x270] sm:$0xff]  ;;  %v2304_v30 = vadd.f32 %v416_v10, %v336_v9  ;;  %v579_v34 = vmax.f32 %v499_v13, 0.0  ;;  %v2315_v35 = vadd.f32 %v415_v14, %v335_v11  ;;  %v578_v42 = vmax.f32 %v498_v18, 0.0 }
  0x26   : > { %739 = vmatpush1.msra.mxu0 %v527_v40  ;;  %v413_v20 = vld [vmem:[%s3187_s1 + $0x1c0] sm:$0xff]  ;;  %v436_v22 = vld [vmem:[%s3187_s1 + $0x278] sm:$0xff]  ;;  %v331_v31 = vld [vmem:[%s3186_s0 + $0x1b0] sm:$0xff]  ;;  %v2329_v43 = vadd.f32 %v414_v16, %v334_v15  ;;  %v577_v49 = vmax.f32 %v2293_v24, 0.0 }
  0x27   : > { %740 = vmatprep.subr.mxu0 %v526_v44  ;;  %v332_v25 = vld [vmem:[%s3186_s0 + $0x1b8] sm:$0xff]  ;;  %v516_v27 = vadd.f32 %v436_v22, %v356_v21  ;;  %v411_v32 = vld [vmem:[%s3187_s1 + $0x1b0] sm:$0xff]  ;;  %v330_v36 = vld [vmem:[%s3186_s0 + $0x1a8] sm:$0xff]  ;;  %v2348_v50 = vadd.f32 %v413_v20, %v333_v19  ;;  %v575_v62 = vmax.f32 %v2315_v35, 0.0 }
  0x28   : > { %741 = vmatpush1.msra.mxu0 %v525_v48  ;;  %v412_v26 = vld [vmem:[%s3187_s1 + $0x1b8] sm:$0xff]  ;;  %v435_v33 = vld [vmem:[%s3187_s1 + $0x270] sm:$0xff]  ;;  %v410_v37 = vld [vmem:[%s3187_s1 + $0x1a8] sm:$0xff]  ;;  %v2372_v63 = vadd.f32 %v411_v32, %v331_v31 }
  0x29   : > { %742 = vmatprep.subr.mxu0 %v524_v52  ;;  %v596_v38 = vmax.f32 %v516_v27, 0.0  ;;  %v515_v39 = vadd.f32 %v435_v33, %v355_v28  ;;  %v354_v40 = vld [vmem:[%s3186_s0 + $0x268] sm:$0xff]  ;;  %v329_v44 = vld [vmem:[%s3186_s0 + $0x1a0] sm:$0xff]  ;;  %v328_v51 = vld [vmem:[%s3186_s0 + $0x198] sm:$0xff]  ;;  %v2360_v57 = vadd.f32 %v412_v26, %v332_v25  ;;  %v2387_v8 = vadd.f32 %v410_v37, %v330_v36 }
  0x2a   : > { %743 = vmatpush1.msra.mxu0 %v523_v56  ;;  %v434_v41 = vld [vmem:[%s3187_s1 + $0x268] sm:$0xff]  ;;  %v409_v45 = vld [vmem:[%s3187_s1 + $0x1a0] sm:$0xff]  ;;  %v408_v52 = vld [vmem:[%s3187_s1 + $0x198] sm:$0xff]  ;;  %v576_v56 = vmax.f32 %v2304_v30, 0.0  ;;  %v573_v14 = vmax.f32 %v2348_v50, 0.0  ;;  %v571_v27 = vmax.f32 %v2372_v63, 0.0 }
  0x2b   : > { %744 = vmatprep.subr.mxu0 %v522_v60  ;;  %v514_v46 = vadd.f32 %v434_v41, %v354_v40  ;;  %v353_v47 = vld [vmem:[%s3186_s0 + $0x260] sm:$0xff]  ;;  %919 = vmatprep.subr.mxu1 %v596_v38  ;;  %v595_v53 = vmax.f32 %v515_v39, 0.0  ;;  %v352_v55 = vld [vmem:[%s3186_s0 + $0x258] sm:$0xff]  ;;  %v327_v58 = vld [vmem:[%s3186_s0 + $0x190] sm:$0xff]  ;;  %v2403_v15 = vadd.f32 %v409_v45, %v329_v44  ;;  %v572_v21 = vmax.f32 %v2360_v57, 0.0 }
  0x2c   : > { %745 = vmatpush1.msra.mxu0 %v521_v1  ;;  %v433_v48 = vld [vmem:[%s3187_s1 + $0x260] sm:$0xff]  ;;  %v407_v59 = vld [vmem:[%s3187_s1 + $0x190] sm:$0xff]  ;;  %v432_v61 = vld [vmem:[%s3187_s1 + $0x258] sm:$0xff]  ;;  %v2415_v22 = vadd.f32 %v408_v52, %v328_v51  ;;  %v570_v35 = vmax.f32 %v2387_v8, 0.0 }
  0x2d   : > { %746 = vmatprep.subr.mxu0 %v520_v6  ;;  %v513_v54 = vadd.f32 %v433_v48, %v353_v47  ;;  %v594_v60 = vmax.f32 %v514_v46, 0.0  ;;  %v326_v0 = vld [vmem:[%s3186_s0 + $0x188] sm:$0xff]  ;;  %920 = vmatpush1.msra.mxu1 %v595_v53  ;;  %v512_v3 = vadd.f32 %v432_v61, %v352_v55  ;;  %v351_v4 = vld [vmem:[%s3186_s0 + $0x250] sm:$0xff]  ;;  %v574_v6 = vmax.f32 %v2329_v43, 0.0  ;;  %v325_v9 = vld [vmem:[%s3186_s0 + $0x180] sm:$0xff] }
  0x2e   : > { %747 = vmatpush1.msra.mxu0 %v519_v12  ;;  %v406_v1 = vld [vmem:[%s3187_s1 + $0x188] sm:$0xff]  ;;  %v431_v5 = vld [vmem:[%s3187_s1 + $0x250] sm:$0xff]  ;;  %v405_v10 = vld [vmem:[%s3187_s1 + $0x180] sm:$0xff]  ;;  %v2427_v28 = vadd.f32 %v407_v59, %v327_v58 }
  0x2f   : > { %748 = vmatprep.subr.mxu0 %v518_v17  ;;  %v593_v2 = vmax.f32 %v513_v54, 0.0  ;;  %921 = vmatprep.subr.mxu1 %v594_v60  ;;  %v511_v11 = vadd.f32 %v431_v5, %v351_v4  ;;  %v350_v12 = vld [vmem:[%s3186_s0 + $0x248] sm:$0xff]  ;;  %v324_v16 = vld [vmem:[%s3186_s0 + $0x178] sm:$0xff]  ;;  %v592_v18 = vmax.f32 %v512_v3, 0.0  ;;  %v349_v20 = vld [vmem:[%s3186_s0 + $0x240] sm:$0xff]  ;;  %v2442_v36 = vadd.f32 %v406_v1, %v326_v0 }
  0x30   : > { %749 = vmatpush1.msra.mxu0 %v517_v23  ;;  %v430_v13 = vld [vmem:[%s3187_s1 + $0x248] sm:$0xff]  ;;  %v404_v17 = vld [vmem:[%s3187_s1 + $0x178] sm:$0xff]  ;;  %v323_v23 = vld [vmem:[%s3186_s0 + $0x170] sm:$0xff]  ;;  %v2462_v43 = vadd.f32 %v405_v10, %v325_v9  ;;  %v567_v55 = vmax.f32 %v2427_v28, 0.0 }
  0x31   : > { %750 = vmatprep.subr.mxu0 %v580_v29  ;;  %922 = vmatpush1.msra.mxu1 %v593_v2  ;;  %v510_v19 = vadd.f32 %v430_v13, %v350_v12  ;;  %v403_v24 = vld [vmem:[%s3187_s1 + $0x170] sm:$0xff]  ;;  %v591_v25 = vmax.f32 %v511_v11, 0.0  ;;  %v429_v26 = vld [vmem:[%s3187_s1 + $0x240] sm:$0xff]  ;;  %v322_v29 = vld [vmem:[%s3186_s0 + $0x168] sm:$0xff]  ;;  %v2474_v50 = vadd.f32 %v404_v17, %v324_v16 }
  0x32   : > { %751 = vmatpush2.msra.mxu0 %v579_v34  ;;  %v402_v30 = vld [vmem:[%s3187_s1 + $0x168] sm:$0xff]  ;;  %923 = vmatprep.subr.mxu1 %v592_v18  ;;  %v509_v32 = vadd.f32 %v429_v26, %v349_v20  ;;  %v348_v33 = vld [vmem:[%s3186_s0 + $0x238] sm:$0xff]  ;;  %v321_v37 = vld [vmem:[%s3186_s0 + $0x160] sm:$0xff]  ;;  %v565_v4 = vmax.f32 %v2462_v43, 0.0 }
  0x33   : > { %752 = vmatprep.subr.mxu0 %v578_v42  ;;  %v590_v31 = vmax.f32 %v510_v19, 0.0  ;;  %v428_v34 = vld [vmem:[%s3187_s1 + $0x238] sm:$0xff]  ;;  %v401_v38 = vld [vmem:[%s3187_s1 + $0x160] sm:$0xff]  ;;  %924 = vmatpush1.msra.mxu1 %v591_v25  ;;  %v347_v40 = vld [vmem:[%s3186_s0 + $0x230] sm:$0xff]  ;;  %v569_v42 = vmax.f32 %v2403_v15, 0.0  ;;  %v2498_v63 = vadd.f32 %v402_v30, %v322_v29  ;;  %v564_v12 = vmax.f32 %v2474_v50, 0.0 }
  0x34   : > { %753 = vmatpush2.msra.mxu0 %v577_v49  ;;  %v508_v39 = vadd.f32 %v428_v34, %v348_v33  ;;  %v427_v41 = vld [vmem:[%s3187_s1 + $0x230] sm:$0xff]  ;;  %v320_v44 = vld [vmem:[%s3186_s0 + $0x158] sm:$0xff]  ;;  %v589_v46 = vmax.f32 %v509_v32, 0.0  ;;  %v346_v48 = vld [vmem:[%s3186_s0 + $0x228] sm:$0xff]  ;;  %v568_v49 = vmax.f32 %v2415_v22, 0.0  ;;  %v481_v5 = vadd.f32 %v401_v38, %v321_v37 }
  0x35   : > { %754 = vmatprep.subr.mxu0 %v576_v56  ;;  %v400_v45 = vld [vmem:[%s3187_s1 + $0x158] sm:$0xff]  ;;  %925 = vmatprep.subr.mxu1 %v590_v31  ;;  %v507_v47 = vadd.f32 %v427_v41, %v347_v40  ;;  %v319_v51 = vld [vmem:[%s3186_s0 + $0x150] sm:$0xff]  ;;  %v426_v54 = vld [vmem:[%s3187_s1 + $0x228] sm:$0xff]  ;;  %v2486_v56 = vadd.f32 %v403_v24, %v323_v23  ;;  %v562_v25 = vmax.f32 %v2498_v63, 0.0 }
  0x36   : > { %755 = vmatpush2.msra.mxu0 %v575_v62  ;;  %v399_v52 = vld [vmem:[%s3187_s1 + $0x150] sm:$0xff]  ;;  %v588_v53 = vmax.f32 %v508_v39, 0.0  ;;  %926 = vmatpush1.msra.mxu1 %v589_v46  ;;  %v318_v57 = vld [vmem:[%s3186_s0 + $0x148] sm:$0xff]  ;;  %v506_v59 = vadd.f32 %v426_v54, %v346_v48  ;;  %v345_v60 = vld [vmem:[%s3186_s0 + $0x220] sm:$0xff]  ;;  %v566_v62 = vmax.f32 %v2442_v36, 0.0  ;;  %v480_v13 = vadd.f32 %v400_v45, %v320_v44 }
  0x37   : > { %756 = vmatprep.subr.mxu0 %v574_v6  ;;  %v587_v58 = vmax.f32 %v507_v47, 0.0  ;;  %v425_v61 = vld [vmem:[%s3187_s1 + $0x220] sm:$0xff]  ;;  %v398_v0 = vld [vmem:[%s3187_s1 + $0x148] sm:$0xff]  ;;  %v344_v2 = vld [vmem:[%s3186_s0 + $0x218] sm:$0xff]  ;;  %v563_v18 = vmax.f32 %v2486_v56, 0.0  ;;  %v479_v19 = vadd.f32 %v399_v52, %v319_v51  ;;  %v561_v31 = vmax.f32 %v481_v5, 0.0 }
  0x38   : > { %757 = vmatpush2.msra.mxu0 %v573_v14  ;;  %927 = vmatprep.subr.mxu1 %v588_v53  ;;  %v505_v1 = vadd.f32 %v425_v61, %v345_v60  ;;  %v424_v3 = vld [vmem:[%s3187_s1 + $0x218] sm:$0xff]  ;;  %v317_v6 = vld [vmem:[%s3186_s0 + $0x140] sm:$0xff]  ;;  %v586_v9 = vmax.f32 %v506_v59, 0.0  ;;  %v343_v11 = vld [vmem:[%s3186_s0 + $0x210] sm:$0xff]  ;;  %v478_v26 = vadd.f32 %v398_v0, %v318_v57  ;;  %v560_v37 = vmax.f32 %v480_v13, 0.0 }
  0x39   : > { %758 = vmatprep.subr.mxu0 %v572_v21  ;;  %v397_v8 = vld [vmem:[%s3187_s1 + $0x140] sm:$0xff]  ;;  %928 = vmatpush1.msra.mxu1 %v587_v58  ;;  %v504_v10 = vadd.f32 %v424_v3, %v344_v2  ;;  %v316_v14 = vld [vmem:[%s3186_s0 + $0x138] sm:$0xff]  ;;  %v423_v17 = vld [vmem:[%s3187_s1 + $0x210] sm:$0xff] }
  0x3a   : > { %759 = vmatpush2.msra.mxu0 %v571_v27  ;;  %v396_v15 = vld [vmem:[%s3187_s1 + $0x138] sm:$0xff]  ;;  %v585_v16 = vmax.f32 %v505_v1, 0.0  ;;  %929 = vmatprep.subr.mxu1 %v586_v9  ;;  %v315_v20 = vld [vmem:[%s3186_s0 + $0x130] sm:$0xff]  ;;  %v503_v22 = vadd.f32 %v423_v17, %v343_v11  ;;  %v342_v23 = vld [vmem:[%s3186_s0 + $0x208] sm:$0xff]  ;;  %v477_v32 = vadd.f32 %v397_v8, %v317_v6  ;;  %v558_v48 = vmax.f32 %v478_v26, 0.0 }
  0x3b   : > { %760 = vmatprep.subr.mxu0 %v570_v35  ;;  %v584_v21 = vmax.f32 %v504_v10, 0.0  ;;  %v422_v24 = vld [vmem:[%s3187_s1 + $0x208] sm:$0xff]  ;;  %v395_v27 = vld [vmem:[%s3187_s1 + $0x130] sm:$0xff]  ;;  %v341_v29 = vld [vmem:[%s3186_s0 + $0x200] sm:$0xff]  ;;  %v476_v38 = vadd.f32 %v396_v15, %v316_v14 }
  0x3c   : > { %761 = vmatpush2.msra.mxu0 %v569_v42  ;;  %930 = vmatpush1.msra.mxu1 %v585_v16  ;;  %v502_v28 = vadd.f32 %v422_v24, %v342_v23  ;;  %v421_v30 = vld [vmem:[%s3187_s1 + $0x200] sm:$0xff]  ;;  %v314_v33 = vld [vmem:[%s3186_s0 + $0x128] sm:$0xff]  ;;  %v583_v35 = vmax.f32 %v503_v22, 0.0  ;;  %v559_v42 = vmax.f32 %v479_v19, 0.0  ;;  %v475_v43 = vadd.f32 %v395_v27, %v315_v20  ;;  %v312_v44 = vld [vmem:[%s3186_s0 + $0x118] sm:$0xff] }
  0x3d   : > { %762 = vmatprep.subr.mxu0 %v568_v49  ;;  %v394_v34 = vld [vmem:[%s3187_s1 + $0x128] sm:$0xff]  ;;  %931 = vmatprep.subr.mxu1 %v584_v21  ;;  %v501_v36 = vadd.f32 %v421_v30, %v341_v29  ;;  %v313_v39 = vld [vmem:[%s3186_s0 + $0x120] sm:$0xff]  ;;  %v392_v45 = vld [vmem:[%s3187_s1 + $0x118] sm:$0xff]  ;;  %v557_v53 = vmax.f32 %v477_v32, 0.0  ;;  %v556_v57 = vmax.f32 %v476_v38, 0.0 }
  0x3e   : > { %763 = vmatpush2.msra.mxu0 %v567_v55  ;;  %v393_v40 = vld [vmem:[%s3187_s1 + $0x120] sm:$0xff]  ;;  %v582_v41 = vmax.f32 %v502_v28, 0.0  ;;  %932 = vmatpush1.msra.mxu1 %v583_v35  ;;  %v599_v47 = vld [vmem:[%s2555_s21 + $0x10] sm:$0xff]  ;;  %v474_v49 = vadd.f32 %v394_v34, %v314_v33  ;;  %v598_v52 = vld [vmem:[%s2555_s21 + $0x8] sm:$0xff]  ;;  %v472_v58 = vadd.f32 %v392_v45, %v312_v44  ;;  %v555_v61 = vmax.f32 %v475_v43, 0.0 }
  0x3f   : > { %764 = vmatprep.subr.mxu0 %v566_v62  ;;  %v581_v46 = vmax.f32 %v501_v36, 0.0  ;;  %v311_v50 = vld [vmem:[%s3186_s0 + $0x110] sm:$0xff]  ;;  %v473_v54 = vadd.f32 %v393_v40, %v313_v39  ;;  %v310_v55 = vld [vmem:[%s3186_s0 + $0x108] sm:$0xff]  ;;  %v309_v59 = vld [vmem:[%s3186_s0 + $0x100] sm:$0xff]  ;;  %782 = vmatprep.mubr.f32.mxu0 %v598_v52 }
  0x40   : > { %765 = vmatpush2.msra.mxu0 %v565_v4  ;;  %933 = vmatprep.subr.mxu1 %v582_v41  ;;  %v391_v51 = vld [vmem:[%s3187_s1 + $0x110] sm:$0xff]  ;;  %v390_v56 = vld [vmem:[%s3187_s1 + $0x108] sm:$0xff]  ;;  %v389_v60 = vld [vmem:[%s3187_s1 + $0x100] sm:$0xff]  ;;  %v554_v0 = vmax.f32 %v474_v49, 0.0  ;;  %v552_v4 = vmax.f32 %v472_v58, 0.0 }
  0x41   : > { %766 = vmatprep.subr.mxu0 %v564_v12  ;;  %934 = vmatpush1.msra.mxu1 %v581_v46  ;;  %v471_v62 = vadd.f32 %v391_v51, %v311_v50  ;;  %v602_v63 = vld [vmem:[%s2555_s21 + $0x28] sm:$0xff]  ;;  %v470_v1 = vadd.f32 %v390_v56, %v310_v55  ;;  %v553_v2 = vmax.f32 %v473_v54, 0.0  ;;  %v469_v3 = vadd.f32 %v389_v60, %v309_v59  ;;  %v605_v6 = vld [vmem:[%s2555_s21 + $0x40] sm:$0xff]  ;;  %v608_v11 = vld [vmem:[%s2555_s21 + $0x58] sm:$0xff] }
  0x42   : > { %767 = vmatpush2.msra.mxu0 %v563_v18  ;;  %1922 = vmatmul.mubr.msk.f32.vlgmr.msra.gmra.mxu1 %vm657_vm0, %v599_v47  ;;  %v597_v10 = vld [vmem:[%s2555_s21] sm:$0xff]  ;;  %v600_v13 = vld [vmem:[%s2555_s21 + $0x18] sm:$0xff]  ;;  %v611_v14 = vld [vmem:[%s2555_s21 + $0x70] sm:$0xff] }
  0x43   : > { %768 = vmatprep.subr.mxu0 %v562_v25  ;;  %973 = vmatprep.mubr.f32.mxu1 %v2006_v7  ;;  %v551_v5 = vmax.f32 %v471_v62, 0.0  ;;  %v550_v8 = vmax.f32 %v470_v1, 0.0  ;;  %v549_v9 = vmax.f32 %v469_v3, 0.0  ;;  %v601_v12 = vld [vmem:[%s2555_s21 + $0x20] sm:$0xff]  ;;  %v604_v15 = vld [vmem:[%s2555_s21 + $0x38] sm:$0xff]  ;;  %v603_v16 = vld [vmem:[%s2555_s21 + $0x30] sm:$0xff] }
  0x44   : > { %769 = vmatpush2.msra.mxu0 %v561_v31  ;;  %v614_v17 = vld [vmem:[%s2555_s21 + $0x88] sm:$0xff]  ;;  %v607_v18 = vld [vmem:[%s2555_s21 + $0x50] sm:$0xff]  ;;  %v617_v20 = vld [vmem:[%s2555_s21 + $0xa0] sm:$0xff] }
  0x45   : > { %770 = vmatprep.subr.mxu0 %v560_v37  ;;  %v606_v19 = vld [vmem:[%s2555_s21 + $0x48] sm:$0xff]  ;;  %v609_v22 = vld [vmem:[%s2555_s21 + $0x60] sm:$0xff]  ;;  %v620_v23 = vld [vmem:[%s2555_s21 + $0xb8] sm:$0xff] }
  0x46   : > { %771 = vmatpush2.msra.mxu0 %v559_v42  ;;  %1923 = vmatmul.mubr.msk.f32.gmra.mxu1 %vm657_vm0, %v602_v63  ;;  %v610_v21 = vld [vmem:[%s2555_s21 + $0x68] sm:$0xff]  ;;  %v613_v24 = vld [vmem:[%s2555_s21 + $0x80] sm:$0xff]  ;;  %v612_v25 = vld [vmem:[%s2555_s21 + $0x78] sm:$0xff] }
  0x47   : > { %772 = vmatprep.subr.mxu0 %v558_v48  ;;  %979 = vmatprep.mubr.f32.mxu1 %v2006_v7  ;;  %v623_v26 = vld [vmem:[%s2555_s21 + $0xd0] sm:$0xff]  ;;  %v616_v27 = vld [vmem:[%s2555_s21 + $0x98] sm:$0xff]  ;;  %v626_v29 = vld [vmem:[%s2555_s21 + $0xe8] sm:$0xff] }
  0x48   : > { %773 = vmatpush2.msra.mxu0 %v557_v53  ;;  %v615_v28 = vld [vmem:[%s2555_s21 + $0x90] sm:$0xff]  ;;  %v618_v31 = vld [vmem:[%s2555_s21 + $0xa8] sm:$0xff]  ;;  %v629_v32 = vld [vmem:[%s2555_s21 + $0x100] sm:$0xff] }
  0x49   : > { %774 = vmatprep.subr.mxu0 %v556_v57  ;;  %v619_v30 = vld [vmem:[%s2555_s21 + $0xb0] sm:$0xff]  ;;  %v622_v33 = vld [vmem:[%s2555_s21 + $0xc8] sm:$0xff]  ;;  %v621_v34 = vld [vmem:[%s2555_s21 + $0xc0] sm:$0xff] }
  0x4a   : > { %775 = vmatpush2.msra.mxu0 %v555_v61  ;;  %1924 = vmatmul.mubr.msk.f32.gmra.mxu1 %vm657_vm0, %v605_v6  ;;  %v632_v35 = vld [vmem:[%s2555_s21 + $0x118] sm:$0xff]  ;;  %v625_v36 = vld [vmem:[%s2555_s21 + $0xe0] sm:$0xff]  ;;  %v635_v38 = vld [vmem:[%s2555_s21 + $0x130] sm:$0xff] }
  0x4b   : > { %776 = vmatprep.subr.mxu0 %v554_v0  ;;  %985 = vmatprep.mubr.f32.mxu1 %v2006_v7  ;;  %v624_v37 = vld [vmem:[%s2555_s21 + $0xd8] sm:$0xff]  ;;  %v627_v40 = vld [vmem:[%s2555_s21 + $0xf0] sm:$0xff]  ;;  %v638_v41 = vld [vmem:[%s2555_s21 + $0x148] sm:$0xff] }
  0x4c   : > { %777 = vmatpush2.msra.mxu0 %v553_v2  ;;  %v628_v39 = vld [vmem:[%s2555_s21 + $0xf8] sm:$0xff]  ;;  %v631_v42 = vld [vmem:[%s2555_s21 + $0x110] sm:$0xff]  ;;  %v630_v43 = vld [vmem:[%s2555_s21 + $0x108] sm:$0xff] }
  0x4d   : > { %778 = vmatprep.subr.mxu0 %v552_v4  ;;  %v641_v44 = vld [vmem:[%s2555_s21 + $0x160] sm:$0xff]  ;;  %v634_v45 = vld [vmem:[%s2555_s21 + $0x128] sm:$0xff]  ;;  %v644_v47 = vld [vmem:[%s2555_s21 + $0x178] sm:$0xff] }
  0x4e   : > { %779 = vmatpush2.msra.mxu0 %v551_v5  ;;  %1925 = vmatmul.mubr.msk.f32.gmra.mxu1 %vm657_vm0, %v608_v11  ;;  %v633_v46 = vld [vmem:[%s2555_s21 + $0x120] sm:$0xff]  ;;  %v636_v49 = vld [vmem:[%s2555_s21 + $0x138] sm:$0xff]  ;;  %v647_v50 = vld [vmem:[%s2555_s21 + $0x190] sm:$0xff] }
  0x4f   : > { %780 = vmatprep.subr.mxu0 %v550_v8  ;;  %991 = vmatprep.mubr.f32.mxu1 %v2006_v7  ;;  %v637_v48 = vld [vmem:[%s2555_s21 + $0x140] sm:$0xff]  ;;  %v640_v51 = vld [vmem:[%s2555_s21 + $0x158] sm:$0xff]  ;;  %v639_v52 = vld [vmem:[%s2555_s21 + $0x150] sm:$0xff] }
  0x50   : > { %781 = vmatpush2.msra.mxu0 %v549_v9  ;;  %v650_v53 = vld [vmem:[%s2555_s21 + $0x1a8] sm:$0xff]  ;;  %v643_v54 = vld [vmem:[%s2555_s21 + $0x170] sm:$0xff]  ;;  %v653_v56 = vld [vmem:[%s2555_s21 + $0x1c0] sm:$0xff] }
  0x51   : > { %783 = vmatmul.mubr.f32.vlgmr.msra.gmra.mxu0 %v597_v10  ;;  %v642_v55 = vld [vmem:[%s2555_s21 + $0x168] sm:$0xff]  ;;  %v645_v58 = vld [vmem:[%s2555_s21 + $0x180] sm:$0xff]  ;;  %v656_v59 = vld [vmem:[%s2555_s21 + $0x1d8] sm:$0xff] }
  0x52   : > { %788 = vmatprep.mubr.f32.mxu0 %v601_v12  ;;  %1926 = vmatmul.mubr.msk.f32.gmra.mxu1 %vm657_vm0, %v611_v14  ;;  %v646_v57 = vld [vmem:[%s2555_s21 + $0x188] sm:$0xff]  ;;  %v649_v60 = vld [vmem:[%s2555_s21 + $0x1a0] sm:$0xff]  ;;  %v648_v61 = vld [vmem:[%s2555_s21 + $0x198] sm:$0xff] }
  0x53   : > { %997 = vmatprep.mubr.f32.mxu1 %v2006_v7  ;;  %v652_v62 = vld [vmem:[%s2555_s21 + $0x1b8] sm:$0xff]  ;;  %v651_v63 = vld [vmem:[%s2555_s21 + $0x1b0] sm:$0xff]  ;;  %v654_v1 = vld [vmem:[%s2555_s21 + $0x1c8] sm:$0xff] }
  0x54   : > { %v655_v0 = vld [vmem:[%s2555_s21 + $0x1d0] sm:$0xff]  ;;  %s1918_s21 = sshll.u32 %s3223_s28, 3 }
  0x55   : > { %789 = vmatmul.mubr.f32.gmra.mxu0 %v600_v13  ;;  %s2948_s14 = scalar_lea.vmem %s3189_s3, %s1918_s21  ;;  %s2963_s29 = scalar_lea.vmem %s3190_s4, %s1918_s21 }
  0x56   : > { %794 = vmatprep.mubr.f32.mxu0 %v604_v15  ;;  %1927 = vmatmul.mubr.msk.f32.gmra.mxu1 %vm657_vm0, %v614_v17 }
  0x57   : > { %1003 = vmatprep.mubr.f32.mxu1 %v2006_v7 }
  0x59   : > { %795 = vmatmul.mubr.f32.gmra.mxu0 %v603_v16 }
  0x5a   : > { %800 = vmatprep.mubr.f32.mxu0 %v607_v18  ;;  %1928 = vmatmul.mubr.msk.f32.gmra.mxu1 %vm657_vm0, %v617_v20 }
  0x5b   : > { %1009 = vmatprep.mubr.f32.mxu1 %v2006_v7 }
  0x5d   : > { %801 = vmatmul.mubr.f32.gmra.mxu0 %v606_v19 }
  0x5e   : > { %806 = vmatprep.mubr.f32.mxu0 %v610_v21  ;;  %1929 = vmatmul.mubr.msk.f32.gmra.mxu1 %vm657_vm0, %v620_v23 }
  0x5f   : > { %1015 = vmatprep.mubr.f32.mxu1 %v2006_v7 }
  0x61   : > { %807 = vmatmul.mubr.f32.gmra.mxu0 %v609_v22 }
  0x62   : > { %812 = vmatprep.mubr.f32.mxu0 %v613_v24  ;;  %1930 = vmatmul.mubr.msk.f32.gmra.mxu1 %vm657_vm0, %v623_v26 }
  0x63   : > { %1021 = vmatprep.mubr.f32.mxu1 %v2006_v7 }
  0x65   : > { %813 = vmatmul.mubr.f32.gmra.mxu0 %v612_v25 }
  0x66   : > { %818 = vmatprep.mubr.f32.mxu0 %v616_v27  ;;  %1931 = vmatmul.mubr.msk.f32.gmra.mxu1 %vm657_vm0, %v626_v29 }
  0x67   : > { %1027 = vmatprep.mubr.f32.mxu1 %v2006_v7 }
  0x69   : > { %819 = vmatmul.mubr.f32.gmra.mxu0 %v615_v28 }
  0x6a   : > { %824 = vmatprep.mubr.f32.mxu0 %v619_v30  ;;  %1932 = vmatmul.mubr.msk.f32.gmra.mxu1 %vm657_vm0, %v629_v32 }
  0x6b   : > { %1033 = vmatprep.mubr.f32.mxu1 %v2006_v7 }
  0x6d   : > { %825 = vmatmul.mubr.f32.gmra.mxu0 %v618_v31 }
  0x6e   : > { %830 = vmatprep.mubr.f32.mxu0 %v622_v33  ;;  %1933 = vmatmul.mubr.msk.f32.gmra.mxu1 %vm657_vm0, %v632_v35 }
  0x6f   : > { %1039 = vmatprep.mubr.f32.mxu1 %v2006_v7 }
  0x71   : > { %831 = vmatmul.mubr.f32.gmra.mxu0 %v621_v34 }
  0x72   : > { %836 = vmatprep.mubr.f32.mxu0 %v625_v36  ;;  %1934 = vmatmul.mubr.msk.f32.gmra.mxu1 %vm657_vm0, %v635_v38 }
  0x73   : > { %1045 = vmatprep.mubr.f32.mxu1 %v2006_v7 }
  0x75   : > { %837 = vmatmul.mubr.f32.gmra.mxu0 %v624_v37 }
  0x76   : > { %842 = vmatprep.mubr.f32.mxu0 %v628_v39  ;;  %1935 = vmatmul.mubr.msk.f32.gmra.mxu1 %vm657_vm0, %v638_v41 }
  0x77   : > { %1051 = vmatprep.mubr.f32.mxu1 %v2006_v7 }
  0x79   : > { %843 = vmatmul.mubr.f32.gmra.mxu0 %v627_v40 }
  0x7a   : > { %848 = vmatprep.mubr.f32.mxu0 %v631_v42  ;;  %1936 = vmatmul.mubr.msk.f32.gmra.mxu1 %vm657_vm0, %v641_v44 }
  0x7b   : > { %1057 = vmatprep.mubr.f32.mxu1 %v2006_v7 }
  0x7d   : > { %849 = vmatmul.mubr.f32.gmra.mxu0 %v630_v43 }
  0x7e   : > { %854 = vmatprep.mubr.f32.mxu0 %v634_v45  ;;  %1937 = vmatmul.mubr.msk.f32.gmra.mxu1 %vm657_vm0, %v644_v47 }
  0x7f   : > { %1063 = vmatprep.mubr.f32.mxu1 %v2006_v7 }
  0x81   : > { %855 = vmatmul.mubr.f32.gmra.mxu0 %v633_v46 }
  0x82   : > { %860 = vmatprep.mubr.f32.mxu0 %v637_v48  ;;  %1938 = vmatmul.mubr.msk.f32.gmra.mxu1 %vm657_vm0, %v647_v50 }
  0x83   : > { %1069 = vmatprep.mubr.f32.mxu1 %v2006_v7 }
  0x85   : > { %861 = vmatmul.mubr.f32.gmra.mxu0 %v636_v49 }
  0x86   : > { %866 = vmatprep.mubr.f32.mxu0 %v640_v51  ;;  %1939 = vmatmul.mubr.msk.f32.gmra.mxu1 %vm657_vm0, %v650_v53 }
  0x87   : > { %1075 = vmatprep.mubr.f32.mxu1 %v2006_v7 }
  0x89   : > { %867 = vmatmul.mubr.f32.gmra.mxu0 %v639_v52 }
  0x8a   : > { %872 = vmatprep.mubr.f32.mxu0 %v643_v54  ;;  %1940 = vmatmul.mubr.msk.f32.gmra.mxu1 %vm657_vm0, %v653_v56 }
  0x8b   : > { %1081 = vmatprep.mubr.f32.mxu1 %v2006_v7 }
  0x8d   : > { %873 = vmatmul.mubr.f32.gmra.mxu0 %v642_v55 }
  0x8e   : > { %878 = vmatprep.mubr.f32.mxu0 %v646_v57  ;;  %1941 = vmatmul.mubr.msk.f32.gmra.mxu1 %vm657_vm0, %v656_v59 }
  0x91   : > { %879 = vmatmul.mubr.f32.gmra.mxu0 %v645_v58 }
  0x92   : > { %884 = vmatprep.mubr.f32.mxu0 %v649_v60 }
  0x95   : > { %885 = vmatmul.mubr.f32.gmra.mxu0 %v648_v61 }
  0x96   : > { %890 = vmatprep.mubr.f32.mxu0 %v652_v62 }
  0x99   : > { %891 = vmatmul.mubr.f32.gmra.mxu0 %v651_v63 }
  0x9a   : > { %896 = vmatprep.mubr.f32.mxu0 %v655_v0 }
  0x9d   : > { %897 = vmatmul.mubr.f32.gmra.mxu0 %v654_v1 }
 0x102   : > { %v969_v2 = vpop.f32.mrf.mxu1 }
 0x104   : > { %v971_v3 = vpop.f32.mrf.mxu1 }
 0x106   : > { %v975_v4 = vpop.f32.mrf.mxu1 }
 0x108   : > { %v977_v7 = vpop.f32.mrf.mxu1 }
 0x10a   : > { %v981_v5 = vpop.f32.mrf.mxu1 }
 0x10c   : > { %v983_v6 = vpop.f32.mrf.mxu1 }
 0x10e   : > { %v987_v9 = vpop.f32.mrf.mxu1 }
 0x110   : > { %v989_v11 = vpop.f32.mrf.mxu1 }
 0x111   : > { %v784_v8 = vpop.f32.mrf.mxu0 }
 0x112   : > { %v2694_v13 = vadd.f32 %v969_v2, %v784_v8  ;;  %v993_v15 = vpop.f32.mrf.mxu1 }
 0x113   : > { %v786_v10 = vpop.f32.mrf.mxu0 }
 0x114   : > { %v2692_v12 = vadd.f32 %v971_v3, %v786_v10  ;;  %v995_v21 = vpop.f32.mrf.mxu1  ;;  %v1190_v25 = vmul.f32 %v2694_v13, %v2694_v13 }
 0x115   : > { %v790_v14 = vpop.f32.mrf.mxu0 }
 0x116   : > { %v2696_v16 = vadd.f32 %v975_v4, %v790_v14  ;;  %v1089_v17 = vsel %vm1088_vm1, %v2692_v12, 0.0  ;;  %v1191_v18 = vmul.f32 %v2692_v12, %v2692_v12  ;;  %v999_v27 = vpop.f32.mrf.mxu1 }
 0x117   : > { %v792_v19 = vpop.f32.mrf.mxu0  ;;  %v1090_v20 = vadd.f32 %v1089_v17, %v2694_v13 }
 0x118   : > { %v2703_v22 = vadd.f32 %v977_v7, %v792_v19  ;;  %v1230_v23 = vsel %vm1088_vm1, %v1191_v18, 0.0  ;;  %v1192_v26 = vmul.f32 %v2696_v16, %v2696_v16  ;;  %v1001_v32 = vpop.f32.mrf.mxu1 }
 0x119   : > { %1091 = vadd.xlane.f32.xlu0 %v1090_v20  ;;  %v796_v24 = vpop.f32.mrf.mxu0  ;;  %v1231_v31 = vadd.f32 %v1230_v23, %v1190_v25 }
 0x11a   : > { %v2710_v28 = vadd.f32 %v981_v5, %v796_v24  ;;  %v1193_v29 = vmul.f32 %v2703_v22, %v2703_v22  ;;  %v1093_v35 = vsel %vm1088_vm1, %v2703_v22, 0.0  ;;  %v1005_v39 = vpop.f32.mrf.mxu1 }
 0x11b   : > { %v798_v30 = vpop.f32.mrf.mxu0  ;;  %v1094_v44 = vadd.f32 %v1093_v35, %v2696_v16 }
 0x11c   : > { %v2714_v33 = vadd.f32 %v983_v6, %v798_v30  ;;  %v1234_v34 = vsel %vm1088_vm1, %v1193_v29, 0.0  ;;  %v1194_v38 = vmul.f32 %v2710_v28, %v2710_v28  ;;  %v1007_v46 = vpop.f32.mrf.mxu1 }
 0x11d   : > { %1232 = vadd.xlane.f32.xlu0 %v1231_v31  ;;  %v802_v36 = vpop.f32.mrf.mxu0  ;;  %v1235_v37 = vadd.f32 %v1234_v34, %v1192_v26 }
 0x11e   : > { %v1097_v40 = vsel %vm1088_vm1, %v2714_v33, 0.0  ;;  %v1195_v41 = vmul.f32 %v2714_v33, %v2714_v33  ;;  %v2725_v42 = vadd.f32 %v987_v9, %v802_v36  ;;  %v1011_v51 = vpop.f32.mrf.mxu1 }
 0x11f   : > { %1236 = vadd.xlane.f32.xlu1 %v1235_v37  ;;  %v804_v43 = vpop.f32.mrf.mxu0  ;;  %v1098_v45 = vadd.f32 %v1097_v40, %v2710_v28 }
 0x120   : > { %v2729_v47 = vadd.f32 %v989_v11, %v804_v43  ;;  %v1238_v48 = vsel %vm1088_vm1, %v1195_v41, 0.0  ;;  %v1196_v57 = vmul.f32 %v2725_v42, %v2725_v42  ;;  %v1013_v58 = vpop.f32.mrf.mxu1 }
 0x121   : > { %1095 = vadd.xlane.f32.xlu0 %v1094_v44  ;;  %v808_v49 = vpop.f32.mrf.mxu0  ;;  %v1239_v50 = vadd.f32 %v1238_v48, %v1194_v38 }
 0x122   : > { %v1101_v52 = vsel %vm1088_vm1, %v2729_v47, 0.0  ;;  %v1197_v53 = vmul.f32 %v2729_v47, %v2729_v47  ;;  %v2736_v54 = vadd.f32 %v993_v15, %v808_v49  ;;  %v1017_v63 = vpop.f32.mrf.mxu1 }
 0x123   : > { %1099 = vadd.xlane.f32.xlu1 %v1098_v45  ;;  %v810_v55 = vpop.f32.mrf.mxu0  ;;  %v1102_v56 = vadd.f32 %v1101_v52, %v2725_v42 }
 0x124   : > { %v2741_v59 = vadd.f32 %v995_v21, %v810_v55  ;;  %v1242_v60 = vsel %vm1088_vm1, %v1197_v53, 0.0  ;;  %v1198_v62 = vmul.f32 %v2736_v54, %v2736_v54  ;;  %v1019_v5 = vpop.f32.mrf.mxu1 }
 0x125   : > { %1240 = vadd.xlane.f32.xlu0 %v1239_v50  ;;  %v814_v61 = vpop.f32.mrf.mxu0  ;;  %v1243_v7 = vadd.f32 %v1242_v60, %v1196_v57 }
 0x126   : > { %v1105_v0 = vsel %vm1088_vm1, %v2741_v59, 0.0  ;;  %v1199_v1 = vmul.f32 %v2741_v59, %v2741_v59  ;;  %v2750_v2 = vadd.f32 %v999_v27, %v814_v61  ;;  %v1023_v11 = vpop.f32.mrf.mxu1 }
 0x127   : > { %1103 = vadd.xlane.f32.xlu1 %v1102_v56  ;;  %v816_v3 = vpop.f32.mrf.mxu0  ;;  %v1106_v4 = vadd.f32 %v1105_v0, %v2736_v54 }
 0x128   : > { %v2753_v6 = vadd.f32 %v1001_v32, %v816_v3  ;;  %v1246_v8 = vsel %vm1088_vm1, %v1199_v1, 0.0  ;;  %v1200_v20 = vmul.f32 %v2750_v2, %v2750_v2  ;;  %v1025_v21 = vpop.f32.mrf.mxu1 }
 0x129   : > { %1107 = vadd.xlane.f32.xlu0 %v1106_v4  ;;  %v820_v9 = vpop.f32.mrf.mxu0  ;;  %v1247_v10 = vadd.f32 %v1246_v8, %v1198_v62 }
 0x12a   : > { %v1109_v14 = vsel %vm1088_vm1, %v2753_v6, 0.0  ;;  %v1201_v15 = vmul.f32 %v2753_v6, %v2753_v6  ;;  %v2760_v17 = vadd.f32 %v1005_v39, %v820_v9  ;;  %v1029_v27 = vpop.f32.mrf.mxu1 }
 0x12b   : > { %1244 = vadd.xlane.f32.xlu1 %v1243_v7  ;;  %v822_v18 = vpop.f32.mrf.mxu0  ;;  %v1110_v19 = vadd.f32 %v1109_v14, %v2750_v2 }
 0x12c   : > { %v2765_v23 = vadd.f32 %v1007_v46, %v822_v18  ;;  %v1250_v24 = vsel %vm1088_vm1, %v1201_v15, 0.0  ;;  %v1202_v26 = vmul.f32 %v2760_v17, %v2760_v17  ;;  %v1031_v36 = vpop.f32.mrf.mxu1 }
 0x12d   : > { %1248 = vadd.xlane.f32.xlu0 %v1247_v10  ;;  %v826_v25 = vpop.f32.mrf.mxu0  ;;  %v1251_v35 = vadd.f32 %v1250_v24, %v1200_v20 }
 0x12e   : > { %v1113_v29 = vsel %vm1088_vm1, %v2765_v23, 0.0  ;;  %v1203_v30 = vmul.f32 %v2765_v23, %v2765_v23  ;;  %v2774_v31 = vadd.f32 %v1011_v51, %v826_v25  ;;  %v1035_v41 = vpop.f32.mrf.mxu1 }
 0x12f   : > { %1111 = vadd.xlane.f32.xlu1 %v1110_v19  ;;  %v828_v32 = vpop.f32.mrf.mxu0  ;;  %v1114_v34 = vadd.f32 %v1113_v29, %v2760_v17 }
 0x130   : > { %v2777_v37 = vadd.f32 %v1013_v58, %v828_v32  ;;  %v1254_v38 = vsel %vm1088_vm1, %v1203_v30, 0.0  ;;  %v1204_v49 = vmul.f32 %v2774_v31, %v2774_v31  ;;  %v1037_v50 = vpop.f32.mrf.mxu1 }
 0x131   : > { %1115 = vadd.xlane.f32.xlu0 %v1114_v34  ;;  %v832_v39 = vpop.f32.mrf.mxu0  ;;  %v1255_v40 = vadd.f32 %v1254_v38, %v1202_v26 }
 0x132   : > { %v1117_v43 = vsel %vm1088_vm1, %v2777_v37, 0.0  ;;  %v1205_v44 = vmul.f32 %v2777_v37, %v2777_v37  ;;  %v2784_v45 = vadd.f32 %v1017_v63, %v832_v39  ;;  %v1041_v56 = vpop.f32.mrf.mxu1 }
 0x133   : > { %1252 = vadd.xlane.f32.xlu1 %v1251_v35  ;;  %v834_v46 = vpop.f32.mrf.mxu0  ;;  %v1118_v48 = vadd.f32 %v1117_v43, %v2774_v31 }
 0x134   : > { %v2789_v51 = vadd.f32 %v1019_v5, %v834_v46  ;;  %v1258_v52 = vsel %vm1088_vm1, %v1205_v44, 0.0  ;;  %v1206_v55 = vmul.f32 %v2784_v45, %v2784_v45  ;;  %v1043_v0 = vpop.f32.mrf.mxu1 }
 0x135   : > { %1256 = vadd.xlane.f32.xlu0 %v1255_v40  ;;  %v838_v53 = vpop.f32.mrf.mxu0  ;;  %v1259_v63 = vadd.f32 %v1258_v52, %v1204_v49 }
 0x136   : > { %v1121_v57 = vsel %vm1088_vm1, %v2789_v51, 0.0  ;;  %v1207_v58 = vmul.f32 %v2789_v51, %v2789_v51  ;;  %v2798_v60 = vadd.f32 %v1023_v11, %v838_v53  ;;  %v1047_v5 = vpop.f32.mrf.mxu1 }
 0x137   : > { %1119 = vadd.xlane.f32.xlu1 %v1118_v48  ;;  %v840_v61 = vpop.f32.mrf.mxu0  ;;  %v1122_v62 = vadd.f32 %v1121_v57, %v2784_v45 }
 0x138   : > { %v2801_v1 = vadd.f32 %v1025_v21, %v840_v61  ;;  %v1262_v3 = vsel %vm1088_vm1, %v1207_v58, 0.0  ;;  %v1208_v15 = vmul.f32 %v2798_v60, %v2798_v60  ;;  %v1049_v18 = vpop.f32.mrf.mxu1  ;;  %v2007_v21 = vmov 0  }
 0x139   : > { %1123 = vadd.xlane.f32.xlu0 %v1122_v62  ;;  %v844_v4 = vpop.f32.mrf.mxu0  ;;  %v1263_v7 = vadd.f32 %v1262_v3, %v1206_v55  ;;  %1957 = vset.pattern.permute.xlu1 %v2007_v21 }
 0x13a   : > { %v1125_v8 = vsel %vm1088_vm1, %v2801_v1, 0.0  ;;  %v1209_v9 = vmul.f32 %v2801_v1, %v2801_v1  ;;  %v2808_v10 = vadd.f32 %v1029_v27, %v844_v4  ;;  %1956 = vset.pattern.permute.xlu0 %v2007_v21  ;;  %v1053_v26 = vpop.f32.mrf.mxu1 }
 0x13b   : > { %1260 = vadd.xlane.f32.xlu1 %v1259_v63  ;;  %v846_v11 = vpop.f32.mrf.mxu0  ;;  %v1126_v14 = vadd.f32 %v1125_v8, %v2798_v60 }
 0x13c   : > { %v2813_v19 = vadd.f32 %v1031_v36, %v846_v11  ;;  %v1266_v20 = vsel %vm1088_vm1, %v1209_v9, 0.0  ;;  %v1210_v25 = vmul.f32 %v2808_v10, %v2808_v10  ;;  %v1055_v36 = vpop.f32.mrf.mxu1 }
 0x13d   : > { %1264 = vadd.xlane.f32.xlu0 %v1263_v7  ;;  %v850_v24 = vpop.f32.mrf.mxu0  ;;  %v1267_v35 = vadd.f32 %v1266_v20, %v1208_v15 }
 0x13e   : > { %v1129_v27 = vsel %vm1088_vm1, %v2813_v19, 0.0  ;;  %v1211_v29 = vmul.f32 %v2813_v19, %v2813_v19  ;;  %v2822_v30 = vadd.f32 %v1035_v41, %v850_v24  ;;  %v1059_v44 = vpop.f32.mrf.mxu1 }
 0x13f   : > { %1127 = vadd.xlane.f32.xlu1 %v1126_v14  ;;  %v852_v32 = vpop.f32.mrf.mxu0  ;;  %v1130_v34 = vadd.f32 %v1129_v27, %v2808_v10 }
 0x140   : > { %v2825_v38 = vadd.f32 %v1037_v50, %v852_v32  ;;  %v1270_v39 = vsel %vm1088_vm1, %v1211_v29, 0.0  ;;  %v1212_v50 = vmul.f32 %v2822_v30, %v2822_v30  ;;  %v1061_v53 = vpop.f32.mrf.mxu1 }
 0x141   : > { %1131 = vadd.xlane.f32.xlu0 %v1130_v34  ;;  %v856_v40 = vpop.f32.mrf.mxu0  ;;  %v1271_v43 = vadd.f32 %v1270_v39, %v1210_v25 }
 0x142   : > { %v1133_v46 = vsel %vm1088_vm1, %v2825_v38, 0.0  ;;  %v1213_v41 = vmul.f32 %v2825_v38, %v2825_v38  ;;  %v2832_v48 = vadd.f32 %v1041_v56, %v856_v40  ;;  %v1065_v62 = vpop.f32.mrf.mxu1 }
 0x143   : > { %1268 = vadd.xlane.f32.xlu1 %v1267_v35  ;;  %v858_v49 = vpop.f32.mrf.mxu0  ;;  %v1134_v52 = vadd.f32 %v1133_v46, %v2822_v30 }
 0x144   : > { %v2837_v55 = vadd.f32 %v1043_v0, %v858_v49  ;;  %v1274_v57 = vsel %vm1088_vm1, %v1213_v41, 0.0  ;;  %v1214_v61 = vmul.f32 %v2832_v48, %v2832_v48  ;;  %v1067_v8 = vpop.f32.mrf.mxu1 }
 0x145   : > { %1272 = vadd.xlane.f32.xlu0 %v1271_v43  ;;  %v862_v58 = vpop.f32.mrf.mxu0  ;;  %v1275_v7 = vadd.f32 %v1274_v57, %v1212_v50 }
 0x146   : > { %v1137_v56 = vsel %vm1088_vm1, %v2837_v55, 0.0  ;;  %v1215_v63 = vmul.f32 %v2837_v55, %v2837_v55  ;;  %v2846_v3 = vadd.f32 %v1047_v5, %v862_v58  ;;  %v1071_v27 = vpop.f32.mrf.mxu1 }
 0x147   : > { %1135 = vadd.xlane.f32.xlu1 %v1134_v52  ;;  %v864_v4 = vpop.f32.mrf.mxu0  ;;  %v1138_v0 = vadd.f32 %v1137_v56, %v2832_v48 }
 0x148   : > { %v2849_v9 = vadd.f32 %v1049_v18, %v864_v4  ;;  %v1278_v11 = vsel %vm1088_vm1, %v1215_v63, 0.0  ;;  %v1216_v18 = vmul.f32 %v2846_v3, %v2846_v3  ;;  %v1073_v41 = vpop.f32.mrf.mxu1 }
 0x149   : > { %1139 = vadd.xlane.f32.xlu0 %v1138_v0  ;;  %v868_v14 = vpop.f32.mrf.mxu0  ;;  %v1279_v15 = vadd.f32 %v1278_v11, %v1214_v61 }
 0x14a   : > { %v1141_v20 = vsel %vm1088_vm1, %v2849_v9, 0.0  ;;  %v1217_v5 = vmul.f32 %v2849_v9, %v2849_v9  ;;  %v2856_v21 = vadd.f32 %v1053_v26, %v868_v14  ;;  %v1077_v4 = vpop.f32.mrf.mxu1 }
 0x14b   : > { %1276 = vadd.xlane.f32.xlu1 %v1275_v7  ;;  %v870_v24 = vpop.f32.mrf.mxu0  ;;  %v1142_v25 = vadd.f32 %v1141_v20, %v2846_v3 }
 0x14c   : > { %3202 = vst [vmem:[#allocation2_spill] sm:$0xff] %v2856_v21  ;;  %v2861_v29 = vadd.f32 %v1055_v36, %v870_v24  ;;  %v1282_v32 = vsel %vm1088_vm1, %v1217_v5, 0.0  ;;  %v1218_v35 = vmul.f32 %v2856_v21, %v2856_v21  ;;  %v1079_v24 = vpop.f32.mrf.mxu1 }
 0x14d   : > { %1280 = vadd.xlane.f32.xlu0 %v1279_v15  ;;  %v874_v34 = vpop.f32.mrf.mxu0  ;;  %v1283_v46 = vadd.f32 %v1282_v32, %v1216_v18 }
 0x14e   : > { %3203 = vst [vmem:[#allocation3_spill] sm:$0xff] %v2861_v29  ;;  %v1145_v26 = vsel %vm1088_vm1, %v2861_v29, 0.0  ;;  %v1219_v39 = vmul.f32 %v2861_v29, %v2861_v29  ;;  %v2870_v40 = vadd.f32 %v1059_v44, %v874_v34 }
 0x14f   : > { %1143 = vadd.xlane.f32.xlu1 %v1142_v25  ;;  %v876_v43 = vpop.f32.mrf.mxu0  ;;  %v1146_v36 = vadd.f32 %v1145_v26, %v2856_v21  ;;  %v1083_v26 = vpop.f32.mrf.mxu1 }
 0x150   : > { %v2873_v49 = vadd.f32 %v1061_v53, %v876_v43  ;;  %v1286_v52 = vsel %vm1088_vm1, %v1219_v39, 0.0  ;;  %v1220_v53 = vmul.f32 %v2870_v40, %v2870_v40 }
 0x151   : > { %1147 = vadd.xlane.f32.xlu0 %v1146_v36  ;;  %v880_v50 = vpop.f32.mrf.mxu0  ;;  %v1287_v57 = vadd.f32 %v1286_v52, %v1218_v35 }
 0x152   : > { %v1149_v58 = vsel %vm1088_vm1, %v2873_v49, 0.0  ;;  %v1221_v44 = vmul.f32 %v2873_v49, %v2873_v49  ;;  %v2880_v61 = vadd.f32 %v1065_v62, %v880_v50 }
 0x153   : > { %1284 = vadd.xlane.f32.xlu1 %v1283_v46  ;;  %v882_v56 = vpop.f32.mrf.mxu0  ;;  %v1150_v63 = vadd.f32 %v1149_v58, %v2870_v40  ;;  %v1085_v58 = vpop.f32.mrf.mxu1 }
 0x154   : > { %3204 = vst [vmem:[#allocation4_spill] sm:$0xff] %v2880_v61  ;;  %v2885_v0 = vadd.f32 %v1067_v8, %v882_v56  ;;  %v1290_v7 = vsel %vm1088_vm1, %v1221_v44, 0.0  ;;  %v1222_v14 = vmul.f32 %v2880_v61, %v2880_v61 }
 0x155   : > { %1288 = vadd.xlane.f32.xlu0 %v1287_v57  ;;  %v886_v11 = vpop.f32.mrf.mxu0  ;;  %v1291_v25 = vadd.f32 %v1290_v7, %v1220_v53 }
 0x156   : > { %3205 = vst [vmem:[#allocation5_spill] sm:$0xff] %v2885_v0  ;;  %v1153_v62 = vsel %vm1088_vm1, %v2885_v0, 0.0  ;;  %v1223_v15 = vmul.f32 %v2885_v0, %v2885_v0  ;;  %v2894_v20 = vadd.f32 %v1071_v27, %v886_v11  ;;  %v1413_v0 = vld [vmem:[%s2948_s14 + $0x18] sm:$0xff] }
 0x157   : > { %1151 = vadd.xlane.f32.xlu1 %v1150_v63  ;;  %v888_v5 = vpop.f32.mrf.mxu0  ;;  %v1154_v8 = vadd.f32 %v1153_v62, %v2880_v61 }
 0x158   : > { %3206 = vst [vmem:[#allocation6_spill] sm:$0xff] %v2894_v20  ;;  %v2897_v18 = vadd.f32 %v1073_v41, %v888_v5  ;;  %v1294_v32 = vsel %vm1088_vm1, %v1223_v15, 0.0  ;;  %v1224_v41 = vmul.f32 %v2894_v20, %v2894_v20 }
 0x159   : > { %1155 = vadd.xlane.f32.xlu0 %v1154_v8  ;;  %v892_v34 = vpop.f32.mrf.mxu0  ;;  %v1295_v35 = vadd.f32 %v1294_v32, %v1222_v14 }
 0x15a   : > { %3207 = vst [vmem:[#allocation7_spill] sm:$0xff] %v2897_v18  ;;  %v1157_v39 = vsel %vm1088_vm1, %v2897_v18, 0.0  ;;  %v1225_v27 = vmul.f32 %v2897_v18, %v2897_v18  ;;  %v2904_v43 = vadd.f32 %v1077_v4, %v892_v34 }
 0x15b   : > { %1292 = vadd.xlane.f32.xlu1 %v1291_v25  ;;  %v894_v36 = vpop.f32.mrf.mxu0  ;;  %v1158_v46 = vadd.f32 %v1157_v39, %v2894_v20 }
 0x15c   : > { %3208 = vst [vmem:[#allocation8_spill] sm:$0xff] %v2904_v43  ;;  %v2909_v52 = vadd.f32 %v1079_v24, %v894_v36  ;;  %v1298_v50 = vsel %vm1088_vm1, %v1225_v27, 0.0  ;;  %v1226_v44 = vmul.f32 %v2904_v43, %v2904_v43 }
 0x15d   : > { %1296 = vadd.xlane.f32.xlu0 %v1295_v35  ;;  %v898_v57 = vpop.f32.mrf.mxu0  ;;  %v1299_v11 = vadd.f32 %v1298_v50, %v1224_v41 }
 0x15e   : > { %3209 = vst [vmem:[#allocation9_spill] sm:$0xff] %v2909_v52  ;;  %v1161_v56 = vsel %vm1088_vm1, %v2909_v52, 0.0  ;;  %v1227_v63 = vmul.f32 %v2909_v52, %v2909_v52  ;;  %v2918_v4 = vadd.f32 %v1083_v26, %v898_v57 }
 0x15f   : > { %1159 = vadd.xlane.f32.xlu1 %v1158_v46  ;;  %v1162_v53 = vadd.f32 %v1161_v56, %v2904_v43  ;;  %v900_v7 = vpop.f32.mrf.mxu0  ;;  %v1412_v43 = vld [vmem:[%s2948_s14 + $0x10] sm:$0xff] }
 0x160   : > { %3210 = vst [vmem:[#allocation10_spill] sm:$0xff] %v2918_v4  ;;  %v2921_v14 = vadd.f32 %v1085_v58, %v900_v7  ;;  %v1302_v62 = vsel %vm1088_vm1, %v1227_v63, 0.0  ;;  %v1228_v25 = vmul.f32 %v2918_v4, %v2918_v4 }
 0x161   : > { %1163 = vadd.xlane.f32.xlu0 %v1162_v53  ;;  %v1303_v15 = vadd.f32 %v1302_v62, %v1226_v44 }
 0x162   : > { %3211 = vst [vmem:[#allocation11_spill] sm:$0xff] %v2921_v14  ;;  %v1165_v5 = vsel %vm1088_vm1, %v2921_v14, 0.0  ;;  %v1229_v8 = vmul.f32 %v2921_v14, %v2921_v14 }
 0x163   : > { %1300 = vadd.xlane.f32.xlu1 %v1299_v11  ;;  %v1166_v24 = vadd.f32 %v1165_v5, %v2918_v4 }
 0x164   : > { %v1306_v32 = vsel %vm1088_vm1, %v1229_v8, 0.0 }
 0x165   : > { %1304 = vadd.xlane.f32.xlu0 %v1303_v15  ;;  %v1307_v34 = vadd.f32 %v1306_v32, %v1228_v25 }
 0x167   : > { %1167 = vadd.xlane.f32.xlu1 %v1166_v24 }
 0x16b   : > { %1308 = vadd.xlane.f32.xlu1 %v1307_v34 }
 0x1a2   : > { %v1092_v35 = vpop.xlane.xlu0 %1091 }
 0x1a3   : > { %v1170_v26 = vmul.f32 0.0051020407, %v1092_v35 }
 0x1a5   : > { %v1330_v27 = vmul.f32 %v1170_v26, %v1170_v26 }
 0x1a6   : > { %v1233_v39 = vpop.xlane.xlu0 %1232 }
 0x1a7   : > { %v1310_v36 = vmul.f32 0.0051020407, %v1233_v39 }
 0x1a8   : > { %v1237_v46 = vpop.xlane.xlu1 %1236 }
 0x1a9   : > { %v1350_v41 = vsub.f32 %v1310_v36, %v1330_v27  ;;  %v1311_v56 = vmul.f32 0.0051020407, %v1237_v46 }
 0x1aa   : > { %v1096_v50 = vpop.xlane.xlu0 %1095 }
 0x1ab   : > { %v1370_v57 = vadd.f32 1e-05, %v1350_v41  ;;  %v1171_v58 = vmul.f32 0.0051020407, %v1096_v50 }
 0x1ac   : > { %v1100_v44 = vpop.xlane.xlu1 %1099 }
 0x1ad   : > { %1958 = vrsqrt.f32 %v1370_v57  ;;  %v1331_v63 = vmul.f32 %v1171_v58, %v1171_v58  ;;  %v2932_v53 = vmul.f32 0.0051020407, %v1100_v44 }
 0x1ae   : > { %v1241_v7 = vpop.xlane.xlu0 %1240 }
 0x1af   : > { %v1351_v11 = vsub.f32 %v1311_v56, %v1331_v63  ;;  %v1332_v62 = vmul.f32 %v2932_v53, %v2932_v53  ;;  %v1312_v15 = vmul.f32 0.0051020407, %v1241_v7  ;;  %v1410_v7 = vld [vmem:[%s2948_s14] sm:$0xff] }
 0x1b0   : > { %v1104_v5 = vpop.xlane.xlu1 %1103 }
 0x1b1   : > { %v1371_v8 = vadd.f32 1e-05, %v1351_v11  ;;  %v1352_v24 = vsub.f32 %v1312_v15, %v1332_v62  ;;  %v2936_v25 = vmul.f32 0.0051020407, %v1104_v5 }
 0x1b2   : > { %v1108_v32 = vpop.xlane.xlu0 %1107 }
 0x1b3   : > { %1960 = vrsqrt.f32 %v1371_v8  ;;  %v1333_v34 = vmul.f32 %v2936_v25, %v2936_v25  ;;  %v2941_v35 = vmul.f32 0.0051020407, %v1108_v32  ;;  %v1372_v27 = vadd.f32 1e-05, %v1352_v24 }
 0x1b4   : > { %v1245_v39 = vpop.xlane.xlu1 %1244 }
 0x1b5   : > { %v1313_v36 = vmul.f32 0.0051020407, %v1245_v39  ;;  %v1334_v50 = vmul.f32 %v2941_v35, %v2941_v35  ;;  %1962 = vrsqrt.f32 %v1372_v27 }
 0x1b6   : > { %v1249_v46 = vpop.xlane.xlu0 %1248 }
 0x1b7   : > { %v1353_v41 = vsub.f32 %v1313_v36, %v1333_v34  ;;  %v1314_v57 = vmul.f32 0.0051020407, %v1249_v46  ;;  %v1411_v34 = vld [vmem:[%s2948_s14 + $0x8] sm:$0xff] }
 0x1b8   : > { %v1112_v44 = vpop.xlane.xlu1 %1111 }
 0x1b9   : > { %v1373_v56 = vadd.f32 1e-05, %v1353_v41  ;;  %v2952_v63 = vmul.f32 0.0051020407, %v1112_v44  ;;  %v1354_v5 = vsub.f32 %v1314_v57, %v1334_v50 }
 0x1ba   : > { %v1959_v11 = vpop.eup %1958  ;;  %v1116_v62 = vpop.xlane.xlu0 %1115 }
 0x1bb   : > { %1964 = vrsqrt.f32 %v1373_v56  ;;  %v1335_v15 = vmul.f32 %v2952_v63, %v2952_v63  ;;  %v1430_v24 = vmul.f32 %v1959_v11, %v1410_v7  ;;  %v1374_v46 = vadd.f32 1e-05, %v1354_v5 }
 0x1bc   : > { %v1253_v8 = vpop.xlane.xlu1 %1252  ;;  %v2965_v41 = vmul.f32 0.0051020407, %v1116_v62 }
 0x1bd   : > { %v1315_v32 = vmul.f32 0.0051020407, %v1253_v8  ;;  %1512 = vperm.xlu0 %1956, %v1430_v24   ;;  %v1470_v7 = vmul.f32 %v1430_v24, %v1170_v26  ;;  %v1450_v8 = vld [vmem:[%s2963_s29] sm:$0xff] }
 0x1be   : > { %v1257_v39 = vpop.xlane.xlu0 %1256  ;;  %v1336_v62 = vmul.f32 %v2965_v41, %v2965_v41 }
 0x1bf   : > { %v1355_v36 = vsub.f32 %v1315_v32, %v1335_v15  ;;  %v1451_v15 = vld [vmem:[%s2963_s29 + $0x8] sm:$0xff]  ;;  %v1316_v5 = vmul.f32 0.0051020407, %v1257_v39  ;;  %v1490_v26 = vsub.f32 %v1450_v8, %v1470_v7 }
 0x1c0   : > { %v1961_v27 = vpop.eup %1960  ;;  %v1120_v50 = vpop.xlane.xlu1 %1119 }
 0x1c1   : > { %v1431_v57 = vmul.f32 %v1961_v27, %v1411_v34  ;;  %v1375_v44 = vadd.f32 1e-05, %v1355_v36  ;;  %v2967_v56 = vmul.f32 0.0051020407, %v1120_v50 }
 0x1c2   : > { %v1124_v11 = vpop.xlane.xlu0 %1123  ;;  %v1963_v24 = vpop.eup %1962 }
 0x1c3   : > { %v1471_v32 = vmul.f32 %v1431_v57, %v1171_v58  ;;  %1966 = vrsqrt.f32 %v1375_v44  ;;  %v1337_v52 = vmul.f32 %v2967_v56, %v2967_v56  ;;  %1517 = vperm.xlu1 %1957, %v1431_v57   ;;  %v2977_v61 = vmul.f32 0.0051020407, %v1124_v11 }
 0x1c4   : > { %v1261_v34 = vpop.xlane.xlu1 %1260  ;;  %1968 = vrsqrt.f32 %v1374_v46  ;;  %v1356_v44 = vsub.f32 %v1316_v5, %v1336_v62  ;;  %v1432_v46 = vmul.f32 %v1963_v24, %v1412_v43 }
 0x1c5   : > { %v1317_v36 = vmul.f32 0.0051020407, %v1261_v34  ;;  %v1491_v27 = vsub.f32 %v1451_v15, %v1471_v32  ;;  %v1338_v8 = vmul.f32 %v2977_v61, %v2977_v61  ;;  %v1453_v32 = vld [vmem:[%s2963_s29 + $0x18] sm:$0xff] }
 0x1c6   : > { %v1265_v50 = vpop.xlane.xlu0 %1264  ;;  %v1376_v62 = vadd.f32 1e-05, %v1356_v44  ;;  %v1472_v43 = vmul.f32 %v1432_v46, %v2932_v53 }
 0x1c7   : > { %v1357_v58 = vsub.f32 %v1317_v36, %v1337_v52  ;;  %1657 = vperm.xlu0 %1956, %v1491_v27   ;;  %1652 = vperm.xlu1 %1957, %v1490_v26   ;;  %v1318_v11 = vmul.f32 0.0051020407, %v1265_v50  ;;  %v1452_v27 = vld [vmem:[%s2963_s29 + $0x10] sm:$0xff]  ;;  %v1415_v26 = vld [vmem:[%s2948_s14 + $0x28] sm:$0xff] }
 0x1c8   : > { %v1965_v57 = vpop.eup %1964  ;;  %v1128_v14 = vpop.xlane.xlu1 %1127 }
 0x1c9   : > { %v1377_v4 = vadd.f32 1e-05, %v1357_v58  ;;  %v2979_v39 = vmul.f32 0.0051020407, %v1128_v14  ;;  %v1433_v15 = vmul.f32 %v1965_v57, %v1413_v0  ;;  %v1358_v24 = vsub.f32 %v1318_v11, %v1338_v8  ;;  %v1455_v8 = vld [vmem:[%s2963_s29 + $0x28] sm:$0xff] }
 0x1ca   : > { %v1132_v7 = vpop.xlane.xlu0 %1131 }
 0x1cb   : > { %1970 = vrsqrt.f32 %v1377_v4  ;;  %v1339_v52 = vmul.f32 %v2979_v39, %v2979_v39  ;;  %1522 = vperm.xlu1 %1957, %v1432_v46   ;;  %v1473_v14 = vmul.f32 %v1433_v15, %v2936_v25  ;;  %v2990_v58 = vmul.f32 0.0051020407, %v1132_v7 }
 0x1cc   : > { %v1269_v5 = vpop.xlane.xlu1 %1268  ;;  %1972 = vrsqrt.f32 %v1376_v62  ;;  %v1378_v29 = vadd.f32 1e-05, %v1358_v24 }
 0x1cd   : > { %v1319_v34 = vmul.f32 0.0051020407, %v1269_v5  ;;  %v1493_v36 = vsub.f32 %v1453_v32, %v1473_v14  ;;  %v1492_v5 = vsub.f32 %v1452_v27, %v1472_v43  ;;  %v1414_v14 = vld [vmem:[%s2948_s14 + $0x20] sm:$0xff]  ;;  %v1340_v7 = vmul.f32 %v2990_v58, %v2990_v58 }
 0x1ce   : > { %v1273_v0 = vpop.xlane.xlu0 %1272 }
 0x1cf   : > { %v1359_v4 = vsub.f32 %v1319_v34, %v1339_v52  ;;  %1527 = vperm.xlu1 %1957, %v1433_v15   ;;  %1667 = vperm.xlu0 %1956, %v1493_v36   ;;  %v1320_v11 = vmul.f32 0.0051020407, %v1273_v0 }
 0x1d0   : > { %v1967_v50 = vpop.eup %1966  ;;  %v1136_v57 = vpop.xlane.xlu1 %1135 }
 0x1d1   : > { %v1379_v44 = vadd.f32 1e-05, %v1359_v4  ;;  %v2992_v25 = vmul.f32 0.0051020407, %v1136_v57  ;;  %v1435_v53 = vmul.f32 %v1967_v50, %v1415_v26  ;;  %v1969_v46 = vpop.eup %1968  ;;  %v1417_v26 = vld [vmem:[%s2948_s14 + $0x38] sm:$0xff]  ;;  %v1360_v50 = vsub.f32 %v1320_v11, %v1340_v7 }
 0x1d2   : > { %v1140_v32 = vpop.xlane.xlu0 %1139  ;;  %v1434_v43 = vmul.f32 %v1969_v46, %v1414_v14 }
 0x1d3   : > { %1974 = vrsqrt.f32 %v1379_v44  ;;  %v1341_v15 = vmul.f32 %v2992_v25, %v2992_v25  ;;  %1662 = vperm.xlu1 %1957, %v1492_v5   ;;  %v1475_v62 = vmul.f32 %v1435_v53, %v2952_v63  ;;  %v3002_v57 = vmul.f32 0.0051020407, %v1140_v32 }
 0x1d4   : > { %v1277_v52 = vpop.xlane.xlu1 %1276  ;;  %1976 = vrsqrt.f32 %v1378_v29  ;;  %v1474_v46 = vmul.f32 %v1434_v43, %v2941_v35  ;;  %v1380_v32 = vadd.f32 1e-05, %v1360_v50 }
 0x1d5   : > { %v1321_v34 = vmul.f32 0.0051020407, %v1277_v52  ;;  %v1495_v27 = vsub.f32 %v1455_v8, %v1475_v62  ;;  %v1454_v8 = vld [vmem:[%s2963_s29 + $0x20] sm:$0xff]  ;;  %v1342_v7 = vmul.f32 %v3002_v57, %v3002_v57 }
 0x1d6   : > { %v1281_v36 = vpop.xlane.xlu0 %1280 }
 0x1d7   : > { %v1361_v24 = vsub.f32 %v1321_v34, %v1341_v15  ;;  %1532 = vperm.xlu1 %1957, %v1434_v43   ;;  %1677 = vperm.xlu0 %1956, %v1495_v27   ;;  %v1457_v15 = vld [vmem:[%s2963_s29 + $0x38] sm:$0xff]  ;;  %v1322_v11 = vmul.f32 0.0051020407, %v1281_v36  ;;  %v1494_v43 = vsub.f32 %v1454_v8, %v1474_v46 }
 0x1d8   : > { %v1971_v4 = vpop.eup %1970  ;;  %v1144_v44 = vpop.xlane.xlu1 %1143 }
 0x1d9   : > { %v1381_v0 = vadd.f32 1e-05, %v1361_v24  ;;  %v3004_v5 = vmul.f32 0.0051020407, %v1144_v44  ;;  %v1437_v63 = vmul.f32 %v1971_v4, %v1417_v26  ;;  %v1973_v34 = vpop.eup %1972  ;;  %v1419_v24 = vld [vmem:[%s2948_s14 + $0x48] sm:$0xff]  ;;  %v1416_v4 = vld [vmem:[%s2948_s14 + $0x30] sm:$0xff]  ;;  %v1362_v50 = vsub.f32 %v1322_v11, %v1342_v7 }
 0x1da   : > { %v1148_v14 = vpop.xlane.xlu0 %1147  ;;  %v1436_v46 = vmul.f32 %v1973_v34, %v1416_v4  ;;  %v1418_v34 = vld [vmem:[%s2948_s14 + $0x40] sm:$0xff]  ;;  %v1421_v4 = vld [vmem:[%s2948_s14 + $0x58] sm:$0xff] }
 0x1db   : > { %1978 = vrsqrt.f32 %v1381_v0  ;;  %v1343_v29 = vmul.f32 %v3004_v5, %v3004_v5  ;;  %1537 = vperm.xlu1 %1957, %v1435_v53   ;;  %v1477_v62 = vmul.f32 %v1437_v63, %v2967_v56  ;;  %v3016_v0 = vmul.f32 0.0051020407, %v1148_v14 }
 0x1dc   : > { %v1285_v52 = vpop.xlane.xlu1 %1284  ;;  %1980 = vrsqrt.f32 %v1380_v32  ;;  %v1382_v14 = vadd.f32 1e-05, %v1362_v50 }
 0x1dd   : > { %v1323_v35 = vmul.f32 0.0051020407, %v1285_v52  ;;  %v1497_v26 = vsub.f32 %v1457_v15, %v1477_v62  ;;  %v1459_v15 = vld [vmem:[%s2963_s29 + $0x48] sm:$0xff]  ;;  %v1344_v7 = vmul.f32 %v3016_v0, %v3016_v0 }
 0x1de   : > { %v1289_v27 = vpop.xlane.xlu0 %1288 }
 0x1df   : > { %v1363_v44 = vsub.f32 %v1323_v35, %v1343_v29  ;;  %1672 = vperm.xlu1 %1957, %v1494_v43   ;;  %1687 = vperm.xlu0 %1956, %v1497_v26   ;;  %v1324_v11 = vmul.f32 0.0051020407, %v1289_v27 }
 0x1e0   : > { %v1975_v53 = vpop.eup %1974  ;;  %v1152_v36 = vpop.xlane.xlu1 %1151 }
 0x1e1   : > { %v1383_v21 = vadd.f32 1e-05, %v1363_v44  ;;  %v3018_v56 = vmul.f32 0.0051020407, %v1152_v36  ;;  %v1439_v52 = vmul.f32 %v1975_v53, %v1419_v24  ;;  %v1977_v32 = vpop.eup %1976  ;;  %v1456_v44 = vld [vmem:[%s2963_s29 + $0x30] sm:$0xff]  ;;  %v1364_v18 = vsub.f32 %v1324_v11, %v1344_v7 }
 0x1e2   : > { %v1156_v8 = vpop.xlane.xlu0 %1155  ;;  %v1438_v50 = vmul.f32 %v1977_v32, %v1418_v34  ;;  %v1458_v34 = vld [vmem:[%s2963_s29 + $0x40] sm:$0xff] }
 0x1e3   : > { %1982 = vrsqrt.f32 %v1383_v21  ;;  %v1345_v29 = vmul.f32 %v3018_v56, %v3018_v56  ;;  %1542 = vperm.xlu1 %1957, %v1436_v46   ;;  %1557 = vperm.xlu0 %1956, %v1439_v52   ;;  %v1479_v35 = vmul.f32 %v1439_v52, %v2979_v39  ;;  %v1476_v21 = vmul.f32 %v1436_v46, %v2965_v41 }
 0x1e4   : > { %v1293_v62 = vpop.xlane.xlu1 %1292  ;;  %1984 = vrsqrt.f32 %v1382_v14  ;;  %v3030_v27 = vmul.f32 0.0051020407, %v1156_v8  ;;  %v1384_v8 = vadd.f32 1e-05, %v1364_v18 }
 0x1e5   : > { %v1325_v43 = vmul.f32 0.0051020407, %v1293_v62  ;;  %v1499_v24 = vsub.f32 %v1459_v15, %v1479_v35  ;;  %v1496_v41 = vsub.f32 %v1456_v44, %v1476_v21 }
 0x1e6   : > { %v1297_v26 = vpop.xlane.xlu0 %1296  ;;  %v1346_v15 = vmul.f32 %v3030_v27, %v3030_v27 }
 0x1e7   : > { %v1365_v53 = vsub.f32 %v1325_v43, %v1345_v29  ;;  %1547 = vperm.xlu1 %1957, %v1437_v63   ;;  %1697 = vperm.xlu0 %1956, %v1499_v24   ;;  %v1461_v63 = vld [vmem:[%s2963_s29 + $0x58] sm:$0xff]  ;;  %v1478_v29 = vmul.f32 %v1438_v50, %v2977_v61  ;;  %v1326_v32 = vmul.f32 0.0051020407, %v1297_v26  ;;  %v1420_v43 = vld [vmem:[%s2948_s14 + $0x50] sm:$0xff]  ;;  %v1423_v24 = vld [vmem:[%s2948_s14 + $0x68] sm:$0xff] }
 0x1e8   : > { %v1979_v36 = vpop.eup %1978  ;;  %v1160_v20 = vpop.xlane.xlu1 %1159 }
 0x1e9   : > { %v1385_v39 = vadd.f32 1e-05, %v1365_v53  ;;  %v3032_v52 = vmul.f32 0.0051020407, %v1160_v20  ;;  %v1441_v62 = vmul.f32 %v1979_v36, %v1421_v4  ;;  %v1981_v11 = vpop.eup %1980  ;;  %v1366_v18 = vsub.f32 %v1326_v32, %v1346_v15 }
 0x1ea   : > { %v1164_v20 = vpop.xlane.xlu0 %1163  ;;  %v1498_v26 = vsub.f32 %v1458_v34, %v1478_v29  ;;  %v1440_v53 = vmul.f32 %v1981_v11, %v1420_v43  ;;  %v1422_v34 = vld [vmem:[%s2948_s14 + $0x60] sm:$0xff]  ;;  %v1425_v43 = vld [vmem:[%s2948_s14 + $0x78] sm:$0xff] }
 0x1eb   : > { %1986 = vrsqrt.f32 %v1385_v39  ;;  %v1347_v46 = vmul.f32 %v3032_v52, %v3032_v52  ;;  %1682 = vperm.xlu1 %1957, %v1496_v41   ;;  %1567 = vperm.xlu0 %1956, %v1441_v62   ;;  %v1481_v7 = vmul.f32 %v1441_v62, %v2992_v25  ;;  %v3044_v36 = vmul.f32 0.0051020407, %v1164_v20 }
 0x1ec   : > { %v1301_v14 = vpop.xlane.xlu1 %1300  ;;  %1988 = vrsqrt.f32 %v1384_v8  ;;  %v1386_v29 = vadd.f32 1e-05, %v1366_v18  ;;  %v1480_v15 = vmul.f32 %v1440_v53, %v2990_v58 }
 0x1ed   : > { %v1327_v35 = vmul.f32 0.0051020407, %v1301_v14  ;;  %v1501_v21 = vsub.f32 %v1461_v63, %v1481_v7  ;;  %v1463_v63 = vld [vmem:[%s2963_s29 + $0x68] sm:$0xff]  ;;  %v1348_v20 = vmul.f32 %v3044_v36, %v3044_v36 }
 0x1ee   : > { %v1305_v41 = vpop.xlane.xlu0 %1304 }
 0x1ef   : > { %v1367_v4 = vsub.f32 %v1327_v35, %v1347_v46  ;;  %1552 = vperm.xlu1 %1957, %v1438_v50   ;;  %1707 = vperm.xlu0 %1956, %v1501_v21   ;;  %v1328_v14 = vmul.f32 0.0051020407, %v1305_v41  ;;  %v1460_v35 = vld [vmem:[%s2963_s29 + $0x50] sm:$0xff] }
 0x1f0   : > { %v1983_v61 = vpop.eup %1982  ;;  %v1168_v44 = vpop.xlane.xlu1 %1167 }
 0x1f1   : > { %v1387_v39 = vadd.f32 1e-05, %v1367_v4  ;;  %v3046_v25 = vmul.f32 0.0051020407, %v1168_v44  ;;  %v1443_v62 = vmul.f32 %v1983_v61, %v1423_v24  ;;  %v1985_v32 = vpop.eup %1984  ;;  %v1368_v58 = vsub.f32 %v1328_v14, %v1348_v20  ;;  %v1465_v44 = vld [vmem:[%s2963_s29 + $0x78] sm:$0xff] }
 0x1f2   : > { %v1442_v4 = vmul.f32 %v1985_v32, %v1422_v34  ;;  %v1467_v32 = vld [vmem:[%s2963_s29 + $0x88] sm:$0xff]  ;;  %v1426_v34 = vld [vmem:[%s2948_s14 + $0x80] sm:$0xff] }
 0x1f3   : > { %1990 = vrsqrt.f32 %v1387_v39  ;;  %v1349_v50 = vmul.f32 %v3046_v25, %v3046_v25  ;;  %1692 = vperm.xlu1 %1957, %v1498_v26   ;;  %v1483_v46 = vmul.f32 %v1443_v62, %v3004_v5  ;;  %1577 = vperm.xlu0 %1956, %v1443_v62   ;;  %v1500_v5 = vsub.f32 %v1460_v35, %v1480_v15  ;;  %v1429_v35 = vld [vmem:[%s2948_s14 + $0x98] sm:$0xff] }
 0x1f4   : > { %v1309_v8 = vpop.xlane.xlu1 %1308  ;;  %1992 = vrsqrt.f32 %v1386_v29  ;;  %v1482_v41 = vmul.f32 %v1442_v4, %v3002_v57 }
 0x1f5   : > { %v1329_v7 = vmul.f32 0.0051020407, %v1309_v8  ;;  %v1503_v11 = vsub.f32 %v1463_v63, %v1483_v46  ;;  %v1427_v63 = vld [vmem:[%s2948_s14 + $0x88] sm:$0xff]  ;;  %v1424_v46 = vld [vmem:[%s2948_s14 + $0x70] sm:$0xff] }
 0x1f7   : > { %v1369_v21 = vsub.f32 %v1329_v7, %v1349_v50  ;;  %1562 = vperm.xlu1 %1957, %v1440_v53   ;;  %1717 = vperm.xlu0 %1956, %v1503_v11   ;;  %v1388_v53 = vadd.f32 1e-05, %v1368_v58  ;;  %v1462_v50 = vld [vmem:[%s2963_s29 + $0x60] sm:$0xff]  ;;  %v1464_v11 = vld [vmem:[%s2963_s29 + $0x70] sm:$0xff] }
 0x1f8   : > { %v1987_v24 = vpop.eup %1986  ;;  %v1502_v15 = vsub.f32 %v1462_v50, %v1482_v41 }
 0x1f9   : > { %v1389_v61 = vadd.f32 1e-05, %v1369_v21  ;;  %v1445_v18 = vmul.f32 %v1987_v24, %v1425_v43  ;;  %v1989_v39 = vpop.eup %1988 }
 0x1fb   : > { %1994 = vrsqrt.f32 %v1389_v61  ;;  %1702 = vperm.xlu1 %1957, %v1500_v5   ;;  %v1485_v26 = vmul.f32 %v1445_v18, %v3018_v56  ;;  %1587 = vperm.xlu0 %1956, %v1445_v18   ;;  %v1444_v56 = vmul.f32 %v1989_v39, %v1424_v46  ;;  %v1466_v18 = vld [vmem:[%s2963_s29 + $0x80] sm:$0xff] }
 0x1fc   : > { %1996 = vrsqrt.f32 %v1388_v53 }
 0x1fd   : > { %v1505_v62 = vsub.f32 %v1465_v44, %v1485_v26  ;;  %v1484_v14 = vmul.f32 %v1444_v56, %v3016_v0  ;;  %v1428_v44 = vld [vmem:[%s2948_s14 + $0x90] sm:$0xff] }
 0x1ff   : > { %1572 = vperm.xlu1 %1957, %v1442_v4   ;;  %1727 = vperm.xlu0 %1956, %v1505_v62   ;;  %v1504_v21 = vsub.f32 %v1464_v11, %v1484_v14  ;;  %v1469_v4 = vld [vmem:[%s2963_s29 + $0x98] sm:$0xff]  ;;  %v1468_v62 = vld [vmem:[%s2963_s29 + $0x90] sm:$0xff] }
 0x200   : > { %v1991_v29 = vpop.eup %1990 }
 0x201   : > { %v1447_v8 = vmul.f32 %v1991_v29, %v1427_v63  ;;  %v1993_v7 = vpop.eup %1992 }
 0x202   : > { %v1446_v5 = vmul.f32 %v1993_v7, %v1426_v34 }
 0x203   : > { %1712 = vperm.xlu1 %1957, %v1502_v15   ;;  %v1487_v20 = vmul.f32 %v1447_v8, %v3032_v52  ;;  %1597 = vperm.xlu0 %1956, %v1447_v8  }
 0x204   : > { %v1486_v0 = vmul.f32 %v1446_v5, %v3030_v27 }
 0x205   : > { %v1507_v57 = vsub.f32 %v1467_v32, %v1487_v20 }
 0x206   : > { %v1506_v26 = vsub.f32 %v1466_v18, %v1486_v0 }
 0x207   : > { %1582 = vperm.xlu1 %1957, %v1444_v56   ;;  %1737 = vperm.xlu0 %1956, %v1507_v57  }
 0x208   : > { %v1995_v43 = vpop.eup %1994 }
 0x209   : > { %v1449_v24 = vmul.f32 %v1995_v43, %v1429_v35  ;;  %v1997_v61 = vpop.eup %1996 }
 0x20a   : > { %v1448_v39 = vmul.f32 %v1997_v61, %v1428_v44 }
 0x20b   : > { %1722 = vperm.xlu1 %1957, %v1504_v21   ;;  %v1489_v52 = vmul.f32 %v1449_v24, %v3046_v25  ;;  %1607 = vperm.xlu0 %1956, %v1449_v24  }
 0x20c   : > { %v1488_v53 = vmul.f32 %v1448_v39, %v3044_v36 }
 0x20d   : > { %v1509_v58 = vsub.f32 %v1469_v4, %v1489_v52 }
 0x20e   : > { %v1508_v41 = vsub.f32 %v1468_v62, %v1488_v53 }
 0x20f   : > { %1592 = vperm.xlu1 %1957, %v1446_v5   ;;  %1747 = vperm.xlu0 %1956, %v1509_v58  }
 0x213   : > { %1732 = vperm.xlu1 %1957, %v1506_v26  }
 0x217   : > { %1602 = vperm.xlu1 %1957, %v1448_v39  }
 0x21b   : > { %1742 = vperm.xlu1 %1957, %v1508_v41  }
 0x238   : > { %v1513_v25 = vpop.permute.xlu0 %1512 }
 0x239   : > { %v1610_v27 = vmul.f32 %v1513_v25, %v2694_v13  ;;  %v1611_v50 = vmul.f32 %v1513_v25, %v2692_v12 }
 0x23e   : > { %v1518_v63 = vpop.permute.xlu1 %1517 }
 0x23f   : > { %v1612_v46 = vmul.f32 %v1518_v63, %v2696_v16  ;;  %v1613_v29 = vmul.f32 %v1518_v63, %v2703_v22 }
 0x242   : > { %v1658_v36 = vpop.permute.xlu0 %1657  ;;  %v1653_v8 = vpop.permute.xlu1 %1652 }
 0x243   : > { %v1752_v15 = vadd.f32 %v1658_v36, %v1612_v46  ;;  %v1753_v56 = vadd.f32 %v1658_v36, %v1613_v29  ;;  %v1750_v13 = vadd.f32 %v1653_v8, %v1610_v27  ;;  %v1751_v12 = vadd.f32 %v1653_v8, %v1611_v50 }
 0x245   : > { %1792 = vst [vmem:[%s3085_s8 + $0x10] sm:$0xff] %v1752_v15  ;;  %1793 = vst.msk [vmem:[%s3085_s8 + $0x18] sm:$0xff] %vm1088_vm1, %v1753_v56 }
 0x246   : > { %1790 = vst [vmem:[%s3085_s8] sm:$0xff] %v1750_v13  ;;  %1791 = vst.msk [vmem:[%s3085_s8 + $0x8] sm:$0xff] %vm1088_vm1, %v1751_v12  ;;  %v1523_v16 = vpop.permute.xlu1 %1522 }
 0x247   : > { %v1614_v14 = vmul.f32 %v1523_v16, %v2710_v28  ;;  %v1615_v7 = vmul.f32 %v1523_v16, %v2714_v33 }
 0x24a   : > { %v1528_v22 = vpop.permute.xlu1 %1527  ;;  %v1668_v57 = vpop.permute.xlu0 %1667 }
 0x24b   : > { %v1616_v32 = vmul.f32 %v1528_v22, %v2725_v42  ;;  %v1617_v20 = vmul.f32 %v1528_v22, %v2729_v47 }
 0x24d   : > { %v1756_v11 = vadd.f32 %v1668_v57, %v1616_v32  ;;  %v1757_v35 = vadd.f32 %v1668_v57, %v1617_v20 }
 0x24e   : > { %v1663_v34 = vpop.permute.xlu1 %1662 }
 0x24f   : > { %1796 = vst [vmem:[%s3085_s8 + $0x30] sm:$0xff] %v1756_v11  ;;  %1797 = vst.msk [vmem:[%s3085_s8 + $0x38] sm:$0xff] %vm1088_vm1, %v1757_v35  ;;  %v1754_v43 = vadd.f32 %v1663_v34, %v1614_v14  ;;  %v1755_v21 = vadd.f32 %v1663_v34, %v1615_v7 }
 0x251   : > { %1794 = vst [vmem:[%s3085_s8 + $0x20] sm:$0xff] %v1754_v43  ;;  %1795 = vst.msk [vmem:[%s3085_s8 + $0x28] sm:$0xff] %vm1088_vm1, %v1755_v21 }
 0x252   : > { %v1533_v42 = vpop.permute.xlu1 %1532  ;;  %v1678_v28 = vpop.permute.xlu0 %1677 }
 0x253   : > { %v1618_v5 = vmul.f32 %v1533_v42, %v2736_v54  ;;  %v1619_v4 = vmul.f32 %v1533_v42, %v2741_v59 }
 0x256   : > { %v1538_v47 = vpop.permute.xlu1 %1537 }
 0x257   : > { %v1620_v33 = vmul.f32 %v1538_v47, %v2750_v2  ;;  %v1621_v24 = vmul.f32 %v1538_v47, %v2753_v6 }
 0x259   : > { %v1760_v52 = vadd.f32 %v1678_v28, %v1620_v33  ;;  %v1761_v58 = vadd.f32 %v1678_v28, %v1621_v24 }
 0x25a   : > { %v1673_v0 = vpop.permute.xlu1 %1672  ;;  %v1688_v61 = vpop.permute.xlu0 %1687 }
 0x25b   : > { %1800 = vst [vmem:[%s3085_s8 + $0x50] sm:$0xff] %v1760_v52  ;;  %1801 = vst.msk [vmem:[%s3085_s8 + $0x58] sm:$0xff] %vm1088_vm1, %v1761_v58  ;;  %v1758_v18 = vadd.f32 %v1673_v0, %v1618_v5  ;;  %v1759_v44 = vadd.f32 %v1673_v0, %v1619_v4  ;;  %v3213_v52 = vld [vmem:[#allocation7_spill] sm:$0xff] }
 0x25d   : > { %1798 = vst [vmem:[%s3085_s8 + $0x40] sm:$0xff] %v1758_v18  ;;  %1799 = vst.msk [vmem:[%s3085_s8 + $0x48] sm:$0xff] %vm1088_vm1, %v1759_v44  ;;  %v3214_v18 = vld [vmem:[#allocation2_spill] sm:$0xff] }
 0x25e   : > { %v1543_v2 = vpop.permute.xlu1 %1542  ;;  %v1558_v6 = vpop.permute.xlu0 %1557 }
 0x25f   : > { %v1628_v54 = vmul.f32 %v1558_v6, %v2798_v60  ;;  %v1629_v59 = vmul.f32 %v1558_v6, %v2801_v1  ;;  %v1622_v63 = vmul.f32 %v1543_v2, %v2760_v17  ;;  %v1623_v27 = vmul.f32 %v1543_v2, %v2765_v23  ;;  %v3215_v2 = vld [vmem:[#allocation3_spill] sm:$0xff] }
 0x262   : > { %v1548_v26 = vpop.permute.xlu1 %1547  ;;  %v1698_v39 = vpop.permute.xlu0 %1697 }
 0x263   : > { %v1624_v53 = vmul.f32 %v1548_v26, %v2774_v31  ;;  %v1625_v62 = vmul.f32 %v1548_v26, %v2777_v37  ;;  %v1768_v41 = vadd.f32 %v1698_v39, %v1628_v54  ;;  %v1769_v25 = vadd.f32 %v1698_v39, %v1629_v59 }
 0x265   : > { %v1764_v50 = vadd.f32 %v1688_v61, %v1624_v53  ;;  %v1765_v46 = vadd.f32 %v1688_v61, %v1625_v62  ;;  %1808 = vst [vmem:[%s3085_s8 + $0x90] sm:$0xff] %v1768_v41  ;;  %1809 = vst.msk [vmem:[%s3085_s8 + $0x98] sm:$0xff] %vm1088_vm1, %v1769_v25  ;;  %v3216_v53 = vld [vmem:[#allocation10_spill] sm:$0xff]  ;;  %v3217_v41 = vld [vmem:[#allocation11_spill] sm:$0xff] }
 0x266   : > { %v1683_v60 = vpop.permute.xlu1 %1682  ;;  %v1568_v31 = vpop.permute.xlu0 %1567 }
 0x267   : > { %1804 = vst [vmem:[%s3085_s8 + $0x70] sm:$0xff] %v1764_v50  ;;  %1805 = vst.msk [vmem:[%s3085_s8 + $0x78] sm:$0xff] %vm1088_vm1, %v1765_v46  ;;  %v1762_v37 = vadd.f32 %v1683_v60, %v1622_v63  ;;  %v1763_v1 = vadd.f32 %v1683_v60, %v1623_v27  ;;  %v1632_v17 = vmul.f32 %v1568_v31, %v2822_v30  ;;  %v3218_v60 = vld [vmem:[#allocation4_spill] sm:$0xff] }
 0x268   : > { %v1633_v23 = vmul.f32 %v1568_v31, %v2825_v38 }
 0x269   : > { %1802 = vst [vmem:[%s3085_s8 + $0x60] sm:$0xff] %v1762_v37  ;;  %1803 = vst.msk [vmem:[%s3085_s8 + $0x68] sm:$0xff] %vm1088_vm1, %v1763_v1  ;;  %v3219_v37 = vld [vmem:[#allocation5_spill] sm:$0xff] }
 0x26a   : > { %v1553_v29 = vpop.permute.xlu1 %1552  ;;  %v1708_v36 = vpop.permute.xlu0 %1707 }
 0x26b   : > { %v1772_v8 = vadd.f32 %v1708_v36, %v1632_v17  ;;  %v1773_v15 = vadd.f32 %v1708_v36, %v1633_v23  ;;  %v1626_v56 = vmul.f32 %v1553_v29, %v2784_v45  ;;  %v1627_v13 = vmul.f32 %v1553_v29, %v2789_v51 }
 0x26d   : > { %1812 = vst [vmem:[%s3085_s8 + $0xb0] sm:$0xff] %v1772_v8  ;;  %1813 = vst.msk [vmem:[%s3085_s8 + $0xb8] sm:$0xff] %vm1088_vm1, %v1773_v15  ;;  %v3220_v8 = vld [vmem:[#allocation8_spill] sm:$0xff] }
 0x26e   : > { %v1693_v12 = vpop.permute.xlu1 %1692  ;;  %v1578_v16 = vpop.permute.xlu0 %1577 }
 0x26f   : > { %v1766_v22 = vadd.f32 %v1693_v12, %v1626_v56  ;;  %v1767_v32 = vadd.f32 %v1693_v12, %v1627_v13  ;;  %v1636_v30 = vmul.f32 %v1578_v16, %v2846_v3  ;;  %v1637_v45 = vmul.f32 %v1578_v16, %v2849_v9  ;;  %v3221_v56 = vld [vmem:[#allocation9_spill] sm:$0xff] }
 0x271   : > { %1806 = vst [vmem:[%s3085_s8 + $0x80] sm:$0xff] %v1766_v22  ;;  %1807 = vst.msk [vmem:[%s3085_s8 + $0x88] sm:$0xff] %vm1088_vm1, %v1767_v32 }
 0x272   : > { %v1563_v38 = vpop.permute.xlu1 %1562  ;;  %v1718_v51 = vpop.permute.xlu0 %1717 }
 0x273   : > { %v1776_v20 = vadd.f32 %v1718_v51, %v1636_v30  ;;  %v1777_v57 = vadd.f32 %v1718_v51, %v1637_v45  ;;  %v1630_v14 = vmul.f32 %v1563_v38, %v2808_v10  ;;  %v1631_v7 = vmul.f32 %v1563_v38, %v2813_v19 }
 0x275   : > { %1816 = vst [vmem:[%s3085_s8 + $0xd0] sm:$0xff] %v1776_v20  ;;  %1817 = vst.msk [vmem:[%s3085_s8 + $0xd8] sm:$0xff] %vm1088_vm1, %v1777_v57 }
 0x276   : > { %v1703_v11 = vpop.permute.xlu1 %1702  ;;  %v1588_v35 = vpop.permute.xlu0 %1587 }
 0x277   : > { %v1770_v34 = vadd.f32 %v1703_v11, %v1630_v14  ;;  %v1771_v43 = vadd.f32 %v1703_v11, %v1631_v7  ;;  %v1640_v3 = vmul.f32 %v1588_v35, %v2870_v40  ;;  %v1641_v10 = vmul.f32 %v1588_v35, %v2873_v49  ;;  %v3212_v40 = vld [vmem:[#allocation6_spill] sm:$0xff] }
 0x279   : > { %1810 = vst [vmem:[%s3085_s8 + $0xa0] sm:$0xff] %v1770_v34  ;;  %1811 = vst.msk [vmem:[%s3085_s8 + $0xa8] sm:$0xff] %vm1088_vm1, %v1771_v43 }
 0x27a   : > { %v1573_v9 = vpop.permute.xlu1 %1572  ;;  %v1728_v19 = vpop.permute.xlu0 %1727 }
 0x27b   : > { %v1780_v21 = vadd.f32 %v1728_v19, %v1640_v3  ;;  %v1781_v42 = vadd.f32 %v1728_v19, %v1641_v10  ;;  %v1634_v47 = vmul.f32 %v1573_v9, %v2832_v48  ;;  %v1635_v28 = vmul.f32 %v1573_v9, %v2837_v55 }
 0x27d   : > { %1820 = vst [vmem:[%s3085_s8 + $0xf0] sm:$0xff] %v1780_v21  ;;  %1821 = vst.msk [vmem:[%s3085_s8 + $0xf8] sm:$0xff] %vm1088_vm1, %v1781_v42 }
 0x27e   : > { %v1713_v33 = vpop.permute.xlu1 %1712  ;;  %v1598_v24 = vpop.permute.xlu0 %1597 }
 0x27f   : > { %v1774_v5 = vadd.f32 %v1713_v33, %v1634_v47  ;;  %v1775_v4 = vadd.f32 %v1713_v33, %v1635_v28  ;;  %v1644_v49 = vmul.f32 %v1598_v24, %v3212_v40  ;;  %v1645_v48 = vmul.f32 %v1598_v24, %v3213_v52 }
 0x281   : > { %1814 = vst [vmem:[%s3085_s8 + $0xc0] sm:$0xff] %v1774_v5  ;;  %1815 = vst.msk [vmem:[%s3085_s8 + $0xc8] sm:$0xff] %vm1088_vm1, %v1775_v4 }
 0x282   : > { %v1583_v58 = vpop.permute.xlu1 %1582  ;;  %v1738_v55 = vpop.permute.xlu0 %1737 }
 0x283   : > { %v1784_v0 = vadd.f32 %v1738_v55, %v1644_v49  ;;  %v1785_v61 = vadd.f32 %v1738_v55, %v1645_v48  ;;  %v1638_v44 = vmul.f32 %v1583_v58, %v3214_v18  ;;  %v1639_v6 = vmul.f32 %v1583_v58, %v3215_v2 }
 0x285   : > { %1824 = vst [vmem:[%s3085_s8 + $0x110] sm:$0xff] %v1784_v0  ;;  %1825 = vst.msk [vmem:[%s3085_s8 + $0x118] sm:$0xff] %vm1088_vm1, %v1785_v61 }
 0x286   : > { %v1723_v54 = vpop.permute.xlu1 %1722  ;;  %v1608_v59 = vpop.permute.xlu0 %1607 }
 0x287   : > { %v1778_v26 = vadd.f32 %v1723_v54, %v1638_v44  ;;  %v1779_v39 = vadd.f32 %v1723_v54, %v1639_v6  ;;  %v1648_v62 = vmul.f32 %v1608_v59, %v3216_v53  ;;  %v1649_v25 = vmul.f32 %v1608_v59, %v3217_v41 }
 0x289   : > { %1818 = vst [vmem:[%s3085_s8 + $0xe0] sm:$0xff] %v1778_v26  ;;  %1819 = vst.msk [vmem:[%s3085_s8 + $0xe8] sm:$0xff] %vm1088_vm1, %v1779_v39 }
 0x28a   : > { %v1593_v63 = vpop.permute.xlu1 %1592  ;;  %v1748_v27 = vpop.permute.xlu0 %1747 }
 0x28b   : > { %v1788_v50 = vadd.f32 %v1748_v27, %v1648_v62  ;;  %v1789_v46 = vadd.f32 %v1748_v27, %v1649_v25  ;;  %v1642_v31 = vmul.f32 %v1593_v63, %v3218_v60  ;;  %v1643_v1 = vmul.f32 %v1593_v63, %v3219_v37 }
 0x28d   : > { %1828 = vst [vmem:[%s3085_s8 + $0x130] sm:$0xff] %v1788_v50  ;;  %1829 = vst.msk [vmem:[%s3085_s8 + $0x138] sm:$0xff] %vm1088_vm1, %v1789_v46 }
 0x28e   : > { %v1733_v17 = vpop.permute.xlu1 %1732 }
 0x28f   : > { %v1782_v23 = vadd.f32 %v1733_v17, %v1642_v31  ;;  %v1783_v29 = vadd.f32 %v1733_v17, %v1643_v1 }
 0x291   : > { %1822 = vst [vmem:[%s3085_s8 + $0x100] sm:$0xff] %v1782_v23  ;;  %1823 = vst.msk [vmem:[%s3085_s8 + $0x108] sm:$0xff] %vm1088_vm1, %v1783_v29 }
 0x292   : > { %v1603_v36 = vpop.permute.xlu1 %1602 }
 0x293   : > { %v1646_v15 = vmul.f32 %v1603_v36, %v3220_v8  ;;  %v1647_v13 = vmul.f32 %v1603_v36, %v3221_v56 }
 0x296   : > { %v1743_v12 = vpop.permute.xlu1 %1742 }
 0x297   : > { %v1786_v16 = vadd.f32 %v1743_v12, %v1646_v15  ;;  %v1787_v22 = vadd.f32 %v1743_v12, %v1647_v13 }
 0x299   : > { %1826 = vst [vmem:[%s3085_s8 + $0x120] sm:$0xff] %v1786_v16  ;;  %1827 = vst.msk [vmem:[%s3085_s8 + $0x128] sm:$0xff] %vm1088_vm1, %v1787_v22 }
 0x29a PF: > { %s15_s18 = sadd.s32 1, %s2004_s18  }
 0x29b   : > { %p12_p4 = scmp.ge.s32.totalorder %s15_s18, 4  }
 0x29d   :  { %14 = sbr.rel (!%p12_p4) target bundleno = 1 (0x1), region = 76 }

</bundles_post_ra>
